<compile_context>
chip_gen: v6e
topology: v6e:2x2x1
jax: 0.10.0
libtpu: 0.0.40
codegen_flags: <defaults>
</compile_context>

<pallas_src>
import functools

import jax
import jax.numpy as jnp
from jax.experimental import pallas as pl
from jax.experimental.pallas import tpu as pltpu


def _conv_stats_kernel(x_ref, w_ref, b_ref, y_ref, mean_ref, rstd_ref,
                       mean_acc, m2_acc, *,
                       KH, KW, tile_rows, Wout, eps, total_hw):
    # x_ref:    (Hp, Wp, Cin)       dilated+padded sample (bf16), whole sample
    # w_ref:    (KH*KW, Cout, Cin)  flipped per-tap weights (bf16)
    # b_ref:    (Cout, 1)           bias (f32)
    # y_ref:    (Cout, tile_hw)     conv + bias tile (f32)
    # mean_ref: (Cout, 1)           per-channel mean (written at last tile)
    # rstd_ref: (Cout, 1)           per-channel 1/sqrt(var+eps) (last tile)
    # mean_acc/m2_acc: (Cout, 1)    running Welford state (VMEM scratch)
    t = pl.program_id(1)
    T = pl.num_programs(1)
    Cin = x_ref.shape[-1]
    tile_hw = tile_rows * Wout

    @pl.when(t == 0)
    def _():
        mean_acc[...] = jnp.zeros_like(mean_acc)
        m2_acc[...] = jnp.zeros_like(m2_acc)

    row0 = pl.multiple_of(t * tile_rows, tile_rows)

    # Per-tap accumulation (no im2col slab): KH*KW matmuls with K = Cin summed
    # into a single f32 accumulator. Contraction on the last dims keeps the
    # result (Cout, tile_hw) lane-dense.
    acc = None
    for kh in range(KH):
        for kw in range(KW):
            win = x_ref[pl.ds(row0 + kh, tile_rows), pl.ds(kw, Wout), :]
            win = win.reshape(tile_hw, Cin)
            part = jax.lax.dot_general(
                w_ref[kh * KW + kw], win, (((1,), (1,)), ((), ())),
                preferred_element_type=jnp.float32)          # (Cout, tile_hw)
            acc = part if acc is None else acc + part
    acc = acc + b_ref[...]                                    # bias over lanes

    y_ref[...] = acc                                          # f32 conv tile

    # Tile statistics, centered while the tile is still hot in vregs.
    n_b = float(tile_hw)
    m_t = jnp.sum(acc, axis=1, keepdims=True) * (1.0 / n_b)
    d = acc - m_t
    m2_t = jnp.sum(d * d, axis=1, keepdims=True)

    # Chan/Welford merge with the running per-channel (mean, M2).
    n_a = t.astype(jnp.float32) * n_b
    n_ab = n_a + n_b
    delta = m_t - mean_acc[...]
    mean_acc[...] = mean_acc[...] + delta * (n_b / n_ab)
    m2_acc[...] = m2_acc[...] + m2_t + (delta * delta) * (n_a * n_b / n_ab)

    @pl.when(t == T - 1)
    def _():
        mean_ref[...] = mean_acc[...]
        var = m2_acc[...] * (1.0 / float(total_hw))
        rstd_ref[...] = jax.lax.rsqrt(var + eps)


def _norm_relu_kernel(y_ref, mean_ref, rstd_ref, o_ref):
    # Normalize + ReLU in f32, cast to the (bf16) output dtype on the store.
    y = y_ref[...]
    o_ref[...] = jnp.maximum((y - mean_ref[...]) * rstd_ref[...],
                             0.0).astype(o_ref.dtype)


def _pick_tile_rows(Hout, Wout, target_hw=4096):
    """Largest divisor r of Hout such that r*Wout is a multiple of 128 and
    <= target_hw (lane-dense, VMEM-bounded tiles). Falls back to a single
    full-sample tile (block == full dim is always legal)."""
    best = None
    for r in range(1, Hout):
        if Hout % r == 0 and (r * Wout) % 128 == 0 and r * Wout <= target_hw:
            best = r
    return best if best is not None else Hout


def upblock_forward(x, weight, bias, *, stride, padding, output_padding,
                    eps=1e-5, out_dtype=jnp.bfloat16):
    """ConvTranspose2d + InstanceNorm2d(affine=False) + ReLU.

    x:      (N, Cin, H, W)        NCHW float32
    weight: (Cin, Cout, KH, KW)   PyTorch ConvTranspose2d weight layout
    bias:   (Cout,)
    returns (N, Cout, Hout, Wout) NCHW, `out_dtype` (default bf16)
    """
    N, Cin, H, W = x.shape
    Cin_w, Cout, KH, KW = weight.shape
    assert Cin_w == Cin
    assert padding <= KH - 1 and padding <= KW - 1, "padding must be <= kernel-1"

    Hout = (H - 1) * stride - 2 * padding + KH + output_padding
    Wout = (W - 1) * stride - 2 * padding + KW + output_padding
    HW = Hout * Wout

    # ---- conv-transpose -> stride-1 correlation. Dilation + padding fused
    # into ONE buffer build (single strided scatter).
    plo_h = KH - 1 - padding
    plo_w = KW - 1 - padding
    Hp, Wp = Hout + KH - 1, Wout + KW - 1
    xh = jnp.transpose(x, (0, 2, 3, 1)).astype(jnp.bfloat16)       # NHWC bf16
    xp = jnp.zeros((N, Hp, Wp, Cin), jnp.bfloat16)
    xp = xp.at[:, plo_h:plo_h + (H - 1) * stride + 1:stride,
                  plo_w:plo_w + (W - 1) * stride + 1:stride, :].set(xh)

    # Flipped per-tap weights: w_taps[kh*KW+kw, co, ci] = W[ci, co, KH-1-kh, KW-1-kw]
    w_flip = weight[:, :, ::-1, ::-1]
    w_taps = jnp.transpose(w_flip, (2, 3, 1, 0)).reshape(KH * KW, Cout, Cin)
    w_taps = w_taps.astype(jnp.bfloat16)
    b2 = bias.reshape(Cout, 1).astype(jnp.float32)

    tile_rows = _pick_tile_rows(Hout, Wout)
    tile_hw = tile_rows * Wout
    T = Hout // tile_rows

    # ---- VMEM budget from the actual block sizes (double-buffered inputs,
    # f32 accumulator + output tiles), capped below physical VMEM.
    xp_bytes = Hp * Wp * Cin * 2
    w_bytes = KH * KW * Cout * Cin * 2
    yblk_bytes = Cout * tile_hw * 4
    est = 2 * xp_bytes + 2 * w_bytes + 4 * yblk_bytes + 8 * Cout * 4
    limit = max(32 * 2 ** 20, int(1.5 * est))
    try:
        limit = min(limit, int(0.85 * pltpu.get_tpu_info().vmem_capacity_bytes))
    except Exception:
        limit = min(limit, 100 * 2 ** 20)

    conv_kernel = functools.partial(
        _conv_stats_kernel, KH=KH, KW=KW, tile_rows=tile_rows, Wout=Wout,
        eps=eps, total_hw=HW)

    # Stage 1: conv + bias per row-tile, per-channel mean / rstd via Welford
    # merge across the "arbitrary" tile axis.
    y, mean, rstd = pl.pallas_call(
        conv_kernel,
        out_shape=(
            jax.ShapeDtypeStruct((N, Cout, HW), jnp.float32),
            jax.ShapeDtypeStruct((N, Cout, 1), jnp.float32),
            jax.ShapeDtypeStruct((N, Cout, 1), jnp.float32),
        ),
        grid=(N, T),
        in_specs=[
            # Whole padded sample; block index constant across t (no re-DMA).
            pl.BlockSpec((None, Hp, Wp, Cin), lambda n, t: (n, 0, 0, 0)),
            # Grid-invariant weights & bias.
            pl.BlockSpec((KH * KW, Cout, Cin), lambda n, t: (0, 0, 0)),
            pl.BlockSpec((Cout, 1), lambda n, t: (0, 0)),
        ],
        out_specs=(
            pl.BlockSpec((None, Cout, tile_hw), lambda n, t: (n, 0, t)),
            pl.BlockSpec((None, Cout, 1), lambda n, t: (n, 0, 0)),
            pl.BlockSpec((None, Cout, 1), lambda n, t: (n, 0, 0)),
        ),
        scratch_shapes=[
            pltpu.VMEM((Cout, 1), jnp.float32),   # running mean
            pltpu.VMEM((Cout, 1), jnp.float32),   # running M2
        ],
        compiler_params=pltpu.CompilerParams(
            dimension_semantics=("parallel", "arbitrary"),
            vmem_limit_bytes=limit),
    )(xp, w_taps, b2)

    # Stage 2: normalize + ReLU per tile, bf16 output (both axes parallel so
    # v7x's two TensorCores share the work even at N=1).
    out = pl.pallas_call(
        _norm_relu_kernel,
        out_shape=jax.ShapeDtypeStruct((N, Cout, HW), out_dtype),
        grid=(N, T),
        in_specs=[
            pl.BlockSpec((None, Cout, tile_hw), lambda n, t: (n, 0, t)),
            pl.BlockSpec((None, Cout, 1), lambda n, t: (n, 0, 0)),
            pl.BlockSpec((None, Cout, 1), lambda n, t: (n, 0, 0)),
        ],
        out_specs=pl.BlockSpec((None, Cout, tile_hw), lambda n, t: (n, 0, t)),
        compiler_params=pltpu.CompilerParams(
            dimension_semantics=("parallel", "parallel"),
            vmem_limit_bytes=limit),
    )(y, mean, rstd)

    # Output is already channels-first: just un-flatten the spatial axis.
    return out.reshape(N, Cout, Hout, Wout)


def _reference(x, weight, bias, *, stride, padding, output_padding, eps=1e-5):
    """Pure-JAX (XLA) reference for correctness checking (f32)."""
    Cin, Cout, KH, KW = weight.shape
    plo_h, phi_h = KH - 1 - padding, KH - 1 - padding + output_padding
    plo_w, phi_w = KW - 1 - padding, KW - 1 - padding + output_padding
    w_oihw = jnp.transpose(weight[:, :, ::-1, ::-1], (1, 0, 2, 3))
    y = jax.lax.conv_general_dilated(
        x, w_oihw, window_strides=(1, 1),
        padding=((plo_h, phi_h), (plo_w, phi_w)),
        lhs_dilation=(stride, stride),
        dimension_numbers=("NCHW", "OIHW", "NCHW"))
    y = y + bias.reshape(1, -1, 1, 1)
    mean = y.mean(axis=(2, 3), keepdims=True)
    var = ((y - mean) ** 2).mean(axis=(2, 3), keepdims=True)
    return jnp.maximum((y - mean) / jnp.sqrt(var + eps), 0.0)


if __name__ == "__main__":
    # Small deterministic example consistent with cycleGAN UpBlock usage:
    # in=8, out=4, kernel=3, stride=2, padding=1, output_padding=1;
    # input (2, 8, 8, 8) -> output (2, 4, 16, 16). Hout=16, Wout=16 gives a
    # tile of 8 rows (tile_hw = 128) and 2 spatial tiles per sample, so the
    # Welford-merge accumulation path is exercised.
    N, Cin, Cout = 2, 8, 4
    H = W = 8
    KH = KW = 3
    stride, padding, output_padding = 2, 1, 1

    key = jax.random.PRNGKey(0)
    kx, kw, kb = jax.random.split(key, 3)
    x = jax.random.normal(kx, (N, Cin, H, W), dtype=jnp.float32)
    weight = jax.random.normal(kw, (Cin, Cout, KH, KW), dtype=jnp.float32) * 0.1
    bias = jax.random.normal(kb, (Cout,), dtype=jnp.float32) * 0.1

    out = upblock_forward(x, weight, bias, stride=stride, padding=padding,
                          output_padding=output_padding)
    out = jax.block_until_ready(out)

    # The kernel multiplies in bf16 (f32 accumulation) and stores bf16, so
    # compare against an f32 XLA reference fed the same bf16-rounded inputs.
    x_bf = x.astype(jnp.bfloat16).astype(jnp.float32)
    w_bf = weight.astype(jnp.bfloat16).astype(jnp.float32)
    ref = _reference(x_bf, w_bf, bias, stride=stride, padding=padding,
                     output_padding=output_padding)

    Hout = (H - 1) * stride - 2 * padding + KH + output_padding
    Wout = (W - 1) * stride - 2 * padding + KW + output_padding
    assert out.shape == (N, Cout, Hout, Wout)
    err = jnp.max(jnp.abs(out.astype(jnp.float32) - ref))
    assert err < 2e-2, f"mismatch vs XLA reference: max abs err {err}"

    print("KERNEL_OK")
</pallas_src>

<mosaic_0001>
module attributes {stable_mosaic.version = 11 : i64} {
  func.func @_conv_stats_kernel(%arg0: i32, %arg1: i32, %arg2: memref<1x18x18x8xbf16, #tpu.memory_space<vmem>>, %arg3: memref<9x4x8xbf16, #tpu.memory_space<vmem>>, %arg4: memref<4x1xf32, #tpu.memory_space<vmem>>, %arg5: memref<1x4x128xf32, #tpu.memory_space<vmem>>, %arg6: memref<1x4x1xf32, #tpu.memory_space<vmem>>, %arg7: memref<1x4x1xf32, #tpu.memory_space<vmem>>, %arg8: memref<4x1xf32, #tpu.memory_space<vmem>>, %arg9: memref<4x1xf32, #tpu.memory_space<vmem>>) attributes {dimension_semantics = [#tpu.dimension_semantics<parallel>, #tpu.dimension_semantics<arbitrary>], iteration_bounds = array<i64: 2, 2>, scalar_prefetch = 0 : i64, scratch_operands = 2 : i64, tpu.core_type = #tpu.core_type<tc>, window_params = [{transform_indices = @transform_0, window_bounds = array<i64: 1, 18, 18, 8>}, {pipeline_mode = #tpu.pipeline_mode<synchronous>, transform_indices = @transform_1, window_bounds = array<i64: 9, 4, 8>}, {pipeline_mode = #tpu.pipeline_mode<synchronous>, transform_indices = @transform_2, window_bounds = array<i64: 4, 1>}, {transform_indices = @transform_3, window_bounds = array<i64: 1, 4, 128>}, {transform_indices = @transform_4, window_bounds = array<i64: 1, 4, 1>}, {transform_indices = @transform_5, window_bounds = array<i64: 1, 4, 1>}]} {
    %c0_i32 = arith.constant 0 : i32
    %0 = arith.cmpi eq, %arg1, %c0_i32 : i32
    %1 = arith.extui %0 : i1 to i32
    %c0_i32_0 = arith.constant 0 : i32
    %2 = arith.cmpi ne, %1, %c0_i32_0 : i32
    scf.if %2 {
      %cst_85 = arith.constant 0.000000e+00 : f32
      %123 = vector.broadcast %cst_85 : f32 to vector<4x1xf32>
      %c0_86 = arith.constant 0 : index
      %c0_87 = arith.constant 0 : index
      %124 = vector.load %arg8[%c0_86, %c0_87] : memref<4x1xf32, #tpu.memory_space<vmem>>, vector<4x1xf32>
      tpu.vector_store %arg8[%c0_86, %c0_87], %123 {strides = array<i32>} : memref<4x1xf32, #tpu.memory_space<vmem>>, vector<4x1xf32>,
      %cst_88 = arith.constant 0.000000e+00 : f32
      %125 = vector.broadcast %cst_88 : f32 to vector<4x1xf32>
      %c0_89 = arith.constant 0 : index
      %c0_90 = arith.constant 0 : index
      %126 = vector.load %arg9[%c0_89, %c0_90] : memref<4x1xf32, #tpu.memory_space<vmem>>, vector<4x1xf32>
      tpu.vector_store %arg9[%c0_89, %c0_90], %125 {strides = array<i32>} : memref<4x1xf32, #tpu.memory_space<vmem>>, vector<4x1xf32>,
    } else {
    }
    %c8_i32 = arith.constant 8 : i32
    %3 = arith.muli %arg1, %c8_i32 : i32
    %4 = tpu.assume_multiple %3, 8 : i32
    %c0_i32_1 = arith.constant 0 : i32
    %5 = arith.addi %4, %c0_i32_1 : i32
    %c0 = arith.constant 0 : index
    %6 = arith.index_cast %5 : i32 to index
    %c0_2 = arith.constant 0 : index
    %c0_3 = arith.constant 0 : index
    %7 = vector.load %arg2[%c0, %6, %c0_2, %c0_3] : memref<1x18x18x8xbf16, #tpu.memory_space<vmem>>, vector<1x8x16x8xbf16>
    %8 = vector.shape_cast %7 : vector<1x8x16x8xbf16> to vector<8x16x8xbf16>
    %9 = vector.shape_cast %8 : vector<8x16x8xbf16> to vector<128x8xbf16>
    %c0_4 = arith.constant 0 : index
    %c0_5 = arith.constant 0 : index
    %c0_6 = arith.constant 0 : index
    %10 = vector.load %arg3[%c0_4, %c0_5, %c0_6] : memref<9x4x8xbf16, #tpu.memory_space<vmem>>, vector<1x4x8xbf16>
    %11 = vector.shape_cast %10 : vector<1x4x8xbf16> to vector<4x8xbf16>
    %cst = arith.constant dense<0.000000e+00> : vector<4x128xf32>
    %12 = tpu.matmul %11, %9, %cst {dimension_numbers = #tpu.dot_dimension_numbers<[1], [1], [0], [0], [0, 0, 1, 0], [], []>} : vector<4x8xbf16>, vector<128x8xbf16>, vector<4x128xf32> -> vector<4x128xf32>
    %c0_i32_7 = arith.constant 0 : i32
    %13 = arith.addi %4, %c0_i32_7 : i32
    %c0_8 = arith.constant 0 : index
    %14 = arith.index_cast %13 : i32 to index
    %c1 = arith.constant 1 : index
    %c0_9 = arith.constant 0 : index
    %15 = vector.load %arg2[%c0_8, %14, %c1, %c0_9] : memref<1x18x18x8xbf16, #tpu.memory_space<vmem>>, vector<1x8x16x8xbf16>
    %16 = vector.shape_cast %15 : vector<1x8x16x8xbf16> to vector<8x16x8xbf16>
    %17 = vector.shape_cast %16 : vector<8x16x8xbf16> to vector<128x8xbf16>
    %c1_10 = arith.constant 1 : index
    %c0_11 = arith.constant 0 : index
    %c0_12 = arith.constant 0 : index
    %18 = vector.load %arg3[%c1_10, %c0_11, %c0_12] : memref<9x4x8xbf16, #tpu.memory_space<vmem>>, vector<1x4x8xbf16>
    %19 = vector.shape_cast %18 : vector<1x4x8xbf16> to vector<4x8xbf16>
    %cst_13 = arith.constant dense<0.000000e+00> : vector<4x128xf32>
    %20 = tpu.matmul %19, %17, %cst_13 {dimension_numbers = #tpu.dot_dimension_numbers<[1], [1], [0], [0], [0, 0, 1, 0], [], []>} : vector<4x8xbf16>, vector<128x8xbf16>, vector<4x128xf32> -> vector<4x128xf32>
    %21 = arith.addf %12, %20 : vector<4x128xf32>
    %c0_i32_14 = arith.constant 0 : i32
    %22 = arith.addi %4, %c0_i32_14 : i32
    %c0_15 = arith.constant 0 : index
    %23 = arith.index_cast %22 : i32 to index
    %c2 = arith.constant 2 : index
    %c0_16 = arith.constant 0 : index
    %24 = vector.load %arg2[%c0_15, %23, %c2, %c0_16] : memref<1x18x18x8xbf16, #tpu.memory_space<vmem>>, vector<1x8x16x8xbf16>
    %25 = vector.shape_cast %24 : vector<1x8x16x8xbf16> to vector<8x16x8xbf16>
    %26 = vector.shape_cast %25 : vector<8x16x8xbf16> to vector<128x8xbf16>
    %c2_17 = arith.constant 2 : index
    %c0_18 = arith.constant 0 : index
    %c0_19 = arith.constant 0 : index
    %27 = vector.load %arg3[%c2_17, %c0_18, %c0_19] : memref<9x4x8xbf16, #tpu.memory_space<vmem>>, vector<1x4x8xbf16>
    %28 = vector.shape_cast %27 : vector<1x4x8xbf16> to vector<4x8xbf16>
    %cst_20 = arith.constant dense<0.000000e+00> : vector<4x128xf32>
    %29 = tpu.matmul %28, %26, %cst_20 {dimension_numbers = #tpu.dot_dimension_numbers<[1], [1], [0], [0], [0, 0, 1, 0], [], []>} : vector<4x8xbf16>, vector<128x8xbf16>, vector<4x128xf32> -> vector<4x128xf32>
    %30 = arith.addf %21, %29 : vector<4x128xf32>
    %c1_i32 = arith.constant 1 : i32
    %31 = arith.addi %4, %c1_i32 : i32
    %c0_21 = arith.constant 0 : index
    %32 = arith.index_cast %31 : i32 to index
    %c0_22 = arith.constant 0 : index
    %c0_23 = arith.constant 0 : index
    %33 = vector.load %arg2[%c0_21, %32, %c0_22, %c0_23] : memref<1x18x18x8xbf16, #tpu.memory_space<vmem>>, vector<1x8x16x8xbf16>
    %34 = vector.shape_cast %33 : vector<1x8x16x8xbf16> to vector<8x16x8xbf16>
    %35 = vector.shape_cast %34 : vector<8x16x8xbf16> to vector<128x8xbf16>
    %c3 = arith.constant 3 : index
    %c0_24 = arith.constant 0 : index
    %c0_25 = arith.constant 0 : index
    %36 = vector.load %arg3[%c3, %c0_24, %c0_25] : memref<9x4x8xbf16, #tpu.memory_space<vmem>>, vector<1x4x8xbf16>
    %37 = vector.shape_cast %36 : vector<1x4x8xbf16> to vector<4x8xbf16>
    %cst_26 = arith.constant dense<0.000000e+00> : vector<4x128xf32>
    %38 = tpu.matmul %37, %35, %cst_26 {dimension_numbers = #tpu.dot_dimension_numbers<[1], [1], [0], [0], [0, 0, 1, 0], [], []>} : vector<4x8xbf16>, vector<128x8xbf16>, vector<4x128xf32> -> vector<4x128xf32>
    %39 = arith.addf %30, %38 : vector<4x128xf32>
    %c1_i32_27 = arith.constant 1 : i32
    %40 = arith.addi %4, %c1_i32_27 : i32
    %c0_28 = arith.constant 0 : index
    %41 = arith.index_cast %40 : i32 to index
    %c1_29 = arith.constant 1 : index
    %c0_30 = arith.constant 0 : index
    %42 = vector.load %arg2[%c0_28, %41, %c1_29, %c0_30] : memref<1x18x18x8xbf16, #tpu.memory_space<vmem>>, vector<1x8x16x8xbf16>
    %43 = vector.shape_cast %42 : vector<1x8x16x8xbf16> to vector<8x16x8xbf16>
    %44 = vector.shape_cast %43 : vector<8x16x8xbf16> to vector<128x8xbf16>
    %c4 = arith.constant 4 : index
    %c0_31 = arith.constant 0 : index
    %c0_32 = arith.constant 0 : index
    %45 = vector.load %arg3[%c4, %c0_31, %c0_32] : memref<9x4x8xbf16, #tpu.memory_space<vmem>>, vector<1x4x8xbf16>
    %46 = vector.shape_cast %45 : vector<1x4x8xbf16> to vector<4x8xbf16>
    %cst_33 = arith.constant dense<0.000000e+00> : vector<4x128xf32>
    %47 = tpu.matmul %46, %44, %cst_33 {dimension_numbers = #tpu.dot_dimension_numbers<[1], [1], [0], [0], [0, 0, 1, 0], [], []>} : vector<4x8xbf16>, vector<128x8xbf16>, vector<4x128xf32> -> vector<4x128xf32>
    %48 = arith.addf %39, %47 : vector<4x128xf32>
    %c1_i32_34 = arith.constant 1 : i32
    %49 = arith.addi %4, %c1_i32_34 : i32
    %c0_35 = arith.constant 0 : index
    %50 = arith.index_cast %49 : i32 to index
    %c2_36 = arith.constant 2 : index
    %c0_37 = arith.constant 0 : index
    %51 = vector.load %arg2[%c0_35, %50, %c2_36, %c0_37] : memref<1x18x18x8xbf16, #tpu.memory_space<vmem>>, vector<1x8x16x8xbf16>
    %52 = vector.shape_cast %51 : vector<1x8x16x8xbf16> to vector<8x16x8xbf16>
    %53 = vector.shape_cast %52 : vector<8x16x8xbf16> to vector<128x8xbf16>
    %c5 = arith.constant 5 : index
    %c0_38 = arith.constant 0 : index
    %c0_39 = arith.constant 0 : index
    %54 = vector.load %arg3[%c5, %c0_38, %c0_39] : memref<9x4x8xbf16, #tpu.memory_space<vmem>>, vector<1x4x8xbf16>
    %55 = vector.shape_cast %54 : vector<1x4x8xbf16> to vector<4x8xbf16>
    %cst_40 = arith.constant dense<0.000000e+00> : vector<4x128xf32>
    %56 = tpu.matmul %55, %53, %cst_40 {dimension_numbers = #tpu.dot_dimension_numbers<[1], [1], [0], [0], [0, 0, 1, 0], [], []>} : vector<4x8xbf16>, vector<128x8xbf16>, vector<4x128xf32> -> vector<4x128xf32>
    %57 = arith.addf %48, %56 : vector<4x128xf32>
    %c2_i32 = arith.constant 2 : i32
    %58 = arith.addi %4, %c2_i32 : i32
    %c0_41 = arith.constant 0 : index
    %59 = arith.index_cast %58 : i32 to index
    %c0_42 = arith.constant 0 : index
    %c0_43 = arith.constant 0 : index
    %60 = vector.load %arg2[%c0_41, %59, %c0_42, %c0_43] : memref<1x18x18x8xbf16, #tpu.memory_space<vmem>>, vector<1x8x16x8xbf16>
    %61 = vector.shape_cast %60 : vector<1x8x16x8xbf16> to vector<8x16x8xbf16>
    %62 = vector.shape_cast %61 : vector<8x16x8xbf16> to vector<128x8xbf16>
    %c6 = arith.constant 6 : index
    %c0_44 = arith.constant 0 : index
    %c0_45 = arith.constant 0 : index
    %63 = vector.load %arg3[%c6, %c0_44, %c0_45] : memref<9x4x8xbf16, #tpu.memory_space<vmem>>, vector<1x4x8xbf16>
    %64 = vector.shape_cast %63 : vector<1x4x8xbf16> to vector<4x8xbf16>
    %cst_46 = arith.constant dense<0.000000e+00> : vector<4x128xf32>
    %65 = tpu.matmul %64, %62, %cst_46 {dimension_numbers = #tpu.dot_dimension_numbers<[1], [1], [0], [0], [0, 0, 1, 0], [], []>} : vector<4x8xbf16>, vector<128x8xbf16>, vector<4x128xf32> -> vector<4x128xf32>
    %66 = arith.addf %57, %65 : vector<4x128xf32>
    %c2_i32_47 = arith.constant 2 : i32
    %67 = arith.addi %4, %c2_i32_47 : i32
    %c0_48 = arith.constant 0 : index
    %68 = arith.index_cast %67 : i32 to index
    %c1_49 = arith.constant 1 : index
    %c0_50 = arith.constant 0 : index
    %69 = vector.load %arg2[%c0_48, %68, %c1_49, %c0_50] : memref<1x18x18x8xbf16, #tpu.memory_space<vmem>>, vector<1x8x16x8xbf16>
    %70 = vector.shape_cast %69 : vector<1x8x16x8xbf16> to vector<8x16x8xbf16>
    %71 = vector.shape_cast %70 : vector<8x16x8xbf16> to vector<128x8xbf16>
    %c7 = arith.constant 7 : index
    %c0_51 = arith.constant 0 : index
    %c0_52 = arith.constant 0 : index
    %72 = vector.load %arg3[%c7, %c0_51, %c0_52] : memref<9x4x8xbf16, #tpu.memory_space<vmem>>, vector<1x4x8xbf16>
    %73 = vector.shape_cast %72 : vector<1x4x8xbf16> to vector<4x8xbf16>
    %cst_53 = arith.constant dense<0.000000e+00> : vector<4x128xf32>
    %74 = tpu.matmul %73, %71, %cst_53 {dimension_numbers = #tpu.dot_dimension_numbers<[1], [1], [0], [0], [0, 0, 1, 0], [], []>} : vector<4x8xbf16>, vector<128x8xbf16>, vector<4x128xf32> -> vector<4x128xf32>
    %75 = arith.addf %66, %74 : vector<4x128xf32>
    %c2_i32_54 = arith.constant 2 : i32
    %76 = arith.addi %4, %c2_i32_54 : i32
    %c0_55 = arith.constant 0 : index
    %77 = arith.index_cast %76 : i32 to index
    %c2_56 = arith.constant 2 : index
    %c0_57 = arith.constant 0 : index
    %78 = vector.load %arg2[%c0_55, %77, %c2_56, %c0_57] : memref<1x18x18x8xbf16, #tpu.memory_space<vmem>>, vector<1x8x16x8xbf16>
    %79 = vector.shape_cast %78 : vector<1x8x16x8xbf16> to vector<8x16x8xbf16>
    %80 = vector.shape_cast %79 : vector<8x16x8xbf16> to vector<128x8xbf16>
    %c8 = arith.constant 8 : index
    %c0_58 = arith.constant 0 : index
    %c0_59 = arith.constant 0 : index
    %81 = vector.load %arg3[%c8, %c0_58, %c0_59] : memref<9x4x8xbf16, #tpu.memory_space<vmem>>, vector<1x4x8xbf16>
    %82 = vector.shape_cast %81 : vector<1x4x8xbf16> to vector<4x8xbf16>
    %cst_60 = arith.constant dense<0.000000e+00> : vector<4x128xf32>
    %83 = tpu.matmul %82, %80, %cst_60 {dimension_numbers = #tpu.dot_dimension_numbers<[1], [1], [0], [0], [0, 0, 1, 0], [], []>} : vector<4x8xbf16>, vector<128x8xbf16>, vector<4x128xf32> -> vector<4x128xf32>
    %84 = arith.addf %75, %83 : vector<4x128xf32>
    %c0_61 = arith.constant 0 : index
    %c0_62 = arith.constant 0 : index
    %85 = vector.load %arg4[%c0_61, %c0_62] : memref<4x1xf32, #tpu.memory_space<vmem>>, vector<4x1xf32>
    %86 = vector.broadcast %85 : vector<4x1xf32> to vector<4x128xf32>
    %87 = arith.addf %84, %86 : vector<4x128xf32>
    %c0_63 = arith.constant 0 : index
    %c0_64 = arith.constant 0 : index
    %c0_65 = arith.constant 0 : index
    %88 = vector.load %arg5[%c0_63, %c0_64, %c0_65] : memref<1x4x128xf32, #tpu.memory_space<vmem>>, vector<1x4x128xf32>
    %89 = vector.shape_cast %88 : vector<1x4x128xf32> to vector<4x128xf32>
    %90 = vector.shape_cast %87 : vector<4x128xf32> to vector<1x4x128xf32>
    tpu.vector_store %arg5[%c0_63, %c0_64, %c0_65], %90 {strides = array<i32>} : memref<1x4x128xf32, #tpu.memory_space<vmem>>, vector<1x4x128xf32>,
    %cst_66 = arith.constant dense<0.000000e+00> : vector<4xf32>
    %91 = vector.multi_reduction <add>, %87, %cst_66 [1] : vector<4x128xf32> to vector<4xf32>
    %92 = vector.shape_cast %91 : vector<4xf32> to vector<4x1xf32>
    %cst_67 = arith.constant 7.812500e-03 : f32
    %93 = vector.broadcast %cst_67 : f32 to vector<4x1xf32>
    %94 = arith.mulf %92, %93 : vector<4x1xf32>
    %95 = vector.broadcast %94 : vector<4x1xf32> to vector<4x128xf32>
    %96 = arith.subf %87, %95 : vector<4x128xf32>
    %97 = arith.mulf %96, %96 : vector<4x128xf32>
    %cst_68 = arith.constant dense<0.000000e+00> : vector<4xf32>
    %98 = vector.multi_reduction <add>, %97, %cst_68 [1] : vector<4x128xf32> to vector<4xf32>
    %99 = vector.shape_cast %98 : vector<4xf32> to vector<4x1xf32>
    %100 = arith.sitofp %arg1 : i32 to f32
    %cst_69 = arith.constant 1.280000e+02 : f32
    %101 = arith.mulf %100, %cst_69 : f32
    %cst_70 = arith.constant 1.280000e+02 : f32
    %102 = arith.addf %101, %cst_70 : f32
    %c0_71 = arith.constant 0 : index
    %c0_72 = arith.constant 0 : index
    %103 = vector.load %arg8[%c0_71, %c0_72] : memref<4x1xf32, #tpu.memory_space<vmem>>, vector<4x1xf32>
    %104 = arith.subf %94, %103 : vector<4x1xf32>
    %c0_73 = arith.constant 0 : index
    %c0_74 = arith.constant 0 : index
    %105 = vector.load %arg8[%c0_73, %c0_74] : memref<4x1xf32, #tpu.memory_space<vmem>>, vector<4x1xf32>
    %cst_75 = arith.constant 1.280000e+02 : f32
    %106 = arith.divf %cst_75, %102 : f32
    %107 = vector.broadcast %106 : f32 to vector<4x1xf32>
    %108 = arith.mulf %104, %107 : vector<4x1xf32>
    %109 = arith.addf %105, %108 : vector<4x1xf32>
    %c0_76 = arith.constant 0 : index
    %c0_77 = arith.constant 0 : index
    %110 = vector.load %arg8[%c0_76, %c0_77] : memref<4x1xf32, #tpu.memory_space<vmem>>, vector<4x1xf32>
    tpu.vector_store %arg8[%c0_76, %c0_77], %109 {strides = array<i32>} : memref<4x1xf32, #tpu.memory_space<vmem>>, vector<4x1xf32>,
    %c0_78 = arith.constant 0 : index
    %c0_79 = arith.constant 0 : index
    %111 = vector.load %arg9[%c0_78, %c0_79] : memref<4x1xf32, #tpu.memory_space<vmem>>, vector<4x1xf32>
    %112 = arith.addf %111, %99 : vector<4x1xf32>
    %113 = arith.mulf %104, %104 : vector<4x1xf32>
    %cst_80 = arith.constant 1.280000e+02 : f32
    %114 = arith.mulf %101, %cst_80 : f32
    %115 = arith.divf %114, %102 : f32
    %116 = vector.broadcast %115 : f32 to vector<4x1xf32>
    %117 = arith.mulf %113, %116 : vector<4x1xf32>
    %118 = arith.addf %112, %117 : vector<4x1xf32>
    %c0_81 = arith.constant 0 : index
    %c0_82 = arith.constant 0 : index
    %119 = vector.load %arg9[%c0_81, %c0_82] : memref<4x1xf32, #tpu.memory_space<vmem>>, vector<4x1xf32>
    tpu.vector_store %arg9[%c0_81, %c0_82], %118 {strides = array<i32>} : memref<4x1xf32, #tpu.memory_space<vmem>>, vector<4x1xf32>,
    %c1_i32_83 = arith.constant 1 : i32
    %120 = arith.cmpi eq, %arg1, %c1_i32_83 : i32
    %121 = arith.extui %120 : i1 to i32
    %c0_i32_84 = arith.constant 0 : i32
    %122 = arith.cmpi ne, %121, %c0_i32_84 : i32
    scf.if %122 {
      %c0_85 = arith.constant 0 : index
      %c0_86 = arith.constant 0 : index
      %123 = vector.load %arg8[%c0_85, %c0_86] : memref<4x1xf32, #tpu.memory_space<vmem>>, vector<4x1xf32>
      %c0_87 = arith.constant 0 : index
      %c0_88 = arith.constant 0 : index
      %c0_89 = arith.constant 0 : index
      %124 = vector.load %arg6[%c0_87, %c0_88, %c0_89] : memref<1x4x1xf32, #tpu.memory_space<vmem>>, vector<1x4x1xf32>
      %125 = vector.shape_cast %124 : vector<1x4x1xf32> to vector<4x1xf32>
      %126 = vector.shape_cast %123 : vector<4x1xf32> to vector<1x4x1xf32>
      tpu.vector_store %arg6[%c0_87, %c0_88, %c0_89], %126 {strides = array<i32>} : memref<1x4x1xf32, #tpu.memory_space<vmem>>, vector<1x4x1xf32>,
      %c0_90 = arith.constant 0 : index
      %c0_91 = arith.constant 0 : index
      %127 = vector.load %arg9[%c0_90, %c0_91] : memref<4x1xf32, #tpu.memory_space<vmem>>, vector<4x1xf32>
      %cst_92 = arith.constant 3.906250e-03 : f32
      %128 = vector.broadcast %cst_92 : f32 to vector<4x1xf32>
      %129 = arith.mulf %127, %128 : vector<4x1xf32>
      %cst_93 = arith.constant 9.99999974E-6 : f32
      %130 = vector.broadcast %cst_93 : f32 to vector<4x1xf32>
      %131 = arith.addf %129, %130 : vector<4x1xf32>
      %132 = math.rsqrt %131 : vector<4x1xf32>
      %c0_94 = arith.constant 0 : index
      %c0_95 = arith.constant 0 : index
      %c0_96 = arith.constant 0 : index
      %133 = vector.load %arg7[%c0_94, %c0_95, %c0_96] : memref<1x4x1xf32, #tpu.memory_space<vmem>>, vector<1x4x1xf32>
      %134 = vector.shape_cast %133 : vector<1x4x1xf32> to vector<4x1xf32>
      %135 = vector.shape_cast %132 : vector<4x1xf32> to vector<1x4x1xf32>
      tpu.vector_store %arg7[%c0_94, %c0_95, %c0_96], %135 {strides = array<i32>} : memref<1x4x1xf32, #tpu.memory_space<vmem>>, vector<1x4x1xf32>,
    } else {
    }
    return
  }
  func.func @transform_0(%arg0: i32, %arg1: i32) -> (i32, i32, i32, i32) {
    %c0_i32 = arith.constant 0 : i32
    %c0_i32_0 = arith.constant 0 : i32
    %c0_i32_1 = arith.constant 0 : i32
    %c0_i32_2 = arith.constant 0 : i32
    return %arg0, %c0_i32, %c0_i32_0, %c0_i32_1 : i32, i32, i32, i32
  }
  func.func @transform_1(%arg0: i32, %arg1: i32) -> (i32, i32, i32) {
    %c0_i32 = arith.constant 0 : i32
    %c0_i32_0 = arith.constant 0 : i32
    %c0_i32_1 = arith.constant 0 : i32
    %c0_i32_2 = arith.constant 0 : i32
    return %c0_i32, %c0_i32_0, %c0_i32_1 : i32, i32, i32
  }
  func.func @transform_2(%arg0: i32, %arg1: i32) -> (i32, i32) {
    %c0_i32 = arith.constant 0 : i32
    %c0_i32_0 = arith.constant 0 : i32
    %c0_i32_1 = arith.constant 0 : i32
    return %c0_i32, %c0_i32_0 : i32, i32
  }
  func.func @transform_3(%arg0: i32, %arg1: i32) -> (i32, i32, i32) {
    %c0_i32 = arith.constant 0 : i32
    %c0_i32_0 = arith.constant 0 : i32
    return %arg0, %c0_i32, %arg1 : i32, i32, i32
  }
  func.func @transform_4(%arg0: i32, %arg1: i32) -> (i32, i32, i32) {
    %c0_i32 = arith.constant 0 : i32
    %c0_i32_0 = arith.constant 0 : i32
    %c0_i32_1 = arith.constant 0 : i32
    return %arg0, %c0_i32, %c0_i32_0 : i32, i32, i32
  }
  func.func @transform_5(%arg0: i32, %arg1: i32) -> (i32, i32, i32) {
    %c0_i32 = arith.constant 0 : i32
    %c0_i32_0 = arith.constant 0 : i32
    %c0_i32_1 = arith.constant 0 : i32
    return %arg0, %c0_i32, %c0_i32_0 : i32, i32, i32
  }
}

</mosaic_0001>

<bundles_post_ra>
// kernel: tpu_custom_call.1
= control target key start
LH: loop header
LB: loop body
LE: loop exit
PB: predicated region body
PF: predicated region fallthrough
CT: control target
= control target key end

     0   :  { %11 = vsyncpa [#allocation5], 0  ;;  %s4186_s0 = inlined_call_operand.vmem [shape: bf16[2,18,18,8], index: 0, kind: input, shape index: {}]   ;;  %s4187_s1 = inlined_call_operand.vmem [shape: bf16[9,4,8], index: 1, kind: input, shape index: {}]   ;;  %s4188_s2 = inlined_call_operand.vmem [shape: f32[4,1], index: 2, kind: input, shape index: {}]   ;;  %s4189_s3 = inlined_call_operand.hbm [shape: f32[2,4,256], index: 3, kind: output, shape index: {0}]   ;;  %s4190_s4 = inlined_call_operand.vmem [shape: f32[2,4,1], index: 4, kind: output, shape index: {1}]   ;;  %s4191_s5 = inlined_call_operand.vmem [shape: f32[2,4,1], index: 5, kind: output, shape index: {2}]  }
   0x1   :  { %13 = vsyncpa [#allocation5 + $0x1], 0  ;;  %s3057_s18 = smov 0   ;;  %s3059_s19 = smov 0  }
   0x2   :  { %s3061_s20 = smov 0   ;;  %s3063_s21 = smov 0  }
   0x3   :  { %s3065_s22 = smov 0   ;;  %s3067_s23 = smov 0  }
   0x4   :  { %s3069_s24 = smov 0   ;;  %s3071_s25 = smov 0  }
   0x5 LB: > { %s2327_s26 = sadd.s32 4294967295, %s3020_s25   ;;  %s2328_s27 = sadd.s32 4294967294, %s3020_s25   ;;  %s3020_s25 = sphi %s3071_s25, %s19_s25   ;;  %s3016_s24 = sphi %s3069_s24, %s4212_s24   ;;  %s3012_s23 = sphi %s3067_s23, %s4211_s23   ;;  %s3008_s22 = sphi %s3065_s22, %s4210_s22   ;;  %s3004_s21 = sphi %s3063_s21, %s4209_s21   ;;  %s3000_s20 = sphi %s3061_s20, %s4208_s20   ;;  %s2996_s19 = sphi %s3059_s19, %s4207_s19   ;;  %s2992_s18 = sphi %s3057_s18, %s4206_s18  }
   0x6   : > { %s28_s28 = sadd.s32 1, %s3012_s23  ;;  %s31_s29 = sadd.s32 1, %s3016_s24 }
   0x7   : > { %p29_p0 = scmp.ge.s32.totalorder %s28_s28, 2  ;;  %p118_p1 = scmp.ne.s32.totalorder %s3000_s20, %s2996_s19 }
   0x8   : > { %p119_p2 = scmp.eq.s32.totalorder %s2327_s26, 3  ;;  %p124_p5 = scmp.ne.s32.totalorder %s2996_s19, %s2992_s18 }
   0x9   : > { %s4214_s28 = smov (%p29_p0, %s28_s28), 0  ;;  %s4216_s29 = smov (!%p29_p0, %s31_s29), %s3016_s24 }
   0xa   : > { %4195 = sst [smem:[#allocation7_spill]] %s4214_s28  ;;  %s104_s30 = ssub.s32 %s3012_s23, %s4214_s28 }
   0xb   : > { %p3108_p3 = por %p119_p2, %p118_p1  ;;  %p33_p4 = scmp.ge.s32.totalorder %s4216_s29, 2 }
   0xc   : > { %p125_p6 = scmp.eq.s32.totalorder %s2328_s27, 3  ;;  %p2331_p7 = scmp.ge.s32.totalorder %s3020_s25, 1 }
   0xd   : > { %s4218_s29 = smov (%p33_p4, %s4216_s29), 0  ;;  %p209_p9 = scmp.lt.s32.totalorder %s3020_s25, 5 }
   0xe   : > { %4197 = sst [smem:[#allocation8_spill]] %s4218_s29  ;;  %p3117_p8 = por %p125_p6, %p124_p5 }
   0xf   : > { %s103_s8 = ssub.s32 %s3016_s24, %s4218_s29  ;;  %s108_s9 = sadd.s32 1, %s3000_s20 }
  0x10   : > { %s105_s10 = sor.u32 %s104_s30, %s103_s8  ;;  %p210_p10 = pnand %p2331_p7, %p209_p9 }
  0x11   : > { %p106_p11 = scmp.eq.s32.totalorder %s105_s10, 0  ;;  %s4194_s12 = sand.u32 (!%p210_p10), 1, %s2996_s19  }
  0x12   : > { %213 = sbr.rel (%p210_p10) target bundleno = 903 (0x387), region = 32  ;;  %p245_p12 = scmp.lt.s32.totalorder (!%p210_p10), %s3008_s22, 1 }
  0x13   : > { %s3126_s11 = scalar_select %p106_p11, %s3000_s20, %s108_s9  }
  0x14   : > { %s3132_s13 = sshll.u32 (!%p210_p10), %s4194_s12, 2  ;;  %p2336_p13 = scmp.ne.s32.totalorder (!%p210_p10), %s3004_s21, 0 }
  0x15   : > { %s232_s12 = scalar_lea.vmem (!%p210_p10), [#allocation4], %s3132_s13 }
  0x17   : > { %s246_s14 = scalar_select %p245_p12, %s3008_s22, 1 }
  0x18   : > { %262 = sbr.rel (%p2336_p13) target bundleno = 31 (0x1f), region = 36 }
  0x19   : > { %s2821_s15 = smul.u32 216, %s246_s14  ;;  %s2334_s16 = sshll.u32 %s246_s14, 2 }
  0x1a   : > { %s3138_s27 = scalar_lea.vmem %s4190_s4, %s2334_s16  ;;  %s3143_s9 = scalar_lea.vmem %s4191_s5, %s2334_s16 }
  0x1b   : > { %s249_s28 = scalar_lea.vmem %s4186_s0, %s2821_s15 }
  0x1d   : > { %vm263_vm0 = vcmask 3072   ;;  %v3022_v0 = vmov 0.0  }
  0x1e   : > { %264 = vst.msk [vmem:[#allocation2] sm:$0xf] %vm263_vm0, %v3022_v0  ;;  %265 = vst.msk [vmem:[#allocation3] sm:$0xf] %vm263_vm0, %v3022_v0 }
  0x1f PF: > { %s2559_s14 = smul.u32 96, %s3004_s21  ;;  %v3023_v1 = vmov 0.0   ;;  %vm295_vm1 = vsmask.f32 3328  ;;  %vm516_vm2 = vcmask 64512   ;;  %vm3024_vm3 = vmmov 0   ;;  %s2130_s29 = scvt.s32.f32 %s3004_s21 }
  0x20   : > { %2641 = vmatprep.subr.bf16.mxu0 %v3023_v1  ;;  %2661 = vmatprep.subr.bf16.mxu1 %v3023_v1  ;;  %vm296_vm4 = vsmask.f32 7440  ;;  %vm715_vm6 = vcmask 1042432   ;;  %vm716_vm7 = vcmask 1046532   ;;  %v2517_v27 = vld [vmem:[%s4187_s1 + $0xe] sm:$0x3] }
  0x21   : > { %s3153_s16 = scalar_lea.vmem %s249_s28, %s2559_s14  ;;  %2657 = vmatprep.mubr.msk.bf16.mxu0 %vm3024_vm3, %v3023_v1  ;;  %2677 = vmatprep.mubr.msk.bf16.mxu1 %vm3024_vm3, %v3023_v1  ;;  %vm3183_vm5 = vmor %vm295_vm1, %vm296_vm4  ;;  %s4122_s15 = smul.f32 128.0, %s2130_s29  ;;  %vm2120_vm9 = vcmask 1043456   ;;  %vm2142_vm10 = vcmask 3072  }
  0x22   : > { %v284_v2 = vld [vmem:[%s3153_s16 + $0x54] sm:$0xf]  ;;  %v3161_v3 = vld [vmem:[%s3153_s16 + $0x58] sm:$0xf]  ;;  %v3164_v4 = vld [vmem:[%s3153_s16 + $0x5c] sm:$0x1] }
  0x23   : > { %v467_v5 = vshrl.u32 %v284_v2, 16  ;;  %v470_v6 = vshll.u32 %v284_v2, 16  ;;  %v476_v7 = vshll.u32 %v3161_v3, 16  ;;  %v480_v8 = vshrl.u32 %v3161_v3, 16  ;;  %v282_v9 = vld [vmem:[%s3153_s16 + $0x48] sm:$0xf]  ;;  %vm3316_vm8 = vmor %vm715_vm6, %vm716_vm7 }
  0x24   : > { %v486_v10 = vshll.u32 %v3164_v4, 16  ;;  %v2357_v11 = vcombine.low %v284_v2, %v3161_v3  ;;  %v3172_v12 = vld [vmem:[%s3153_s16 + $0x4c] sm:$0xf]  ;;  %v3175_v17 = vld [vmem:[%s3153_s16 + $0x50] sm:$0x1]  ;;  %v443_v20 = vshrl.u32 %v282_v9, 16 }
  0x25   : > { %v469_v13 = vrot.slane %v467_v5, 4  ;;  %v472_v14 = vrot.slane %v470_v6, 5  ;;  %v478_v15 = vrot.slane %v476_v7, 5  ;;  %v482_v16 = vrot.slane %v480_v8, 4  ;;  %v280_v26 = vld [vmem:[%s3153_s16 + $0x3c] sm:$0xf] }
  0x26   : > { %v488_v18 = vrot.slane %v486_v10, 5  ;;  %v649_v19 = vsel %vm516_vm2, %v2357_v11, 0  ;;  %v446_v21 = vshll.u32 %v282_v9, 16  ;;  %v452_v24 = vshll.u32 %v3172_v12, 16  ;;  %v3191_v36 = vld [vmem:[%s3153_s16 + $0x40] sm:$0xf] }
  0x27   : > { %v473_v22 = vor.u32 %v472_v14, %v469_v13  ;;  %v483_v23 = vor.u32 %v482_v16, %v478_v15  ;;  %2662 = vmatpush3.bf16.xpose.msra.mxu1 %v649_v19  ;;  %v456_v25 = vshrl.u32 %v3172_v12, 16  ;;  %v445_v28 = vrot.slane %v443_v20, 4  ;;  %v3195_v40 = vld [vmem:[%s3153_s16 + $0x44] sm:$0x1]  ;;  %v278_v54 = vld [vmem:[%s3153_s16 + $0x30] sm:$0xf] }
  0x28   : > { %v448_v29 = vrot.slane %v446_v21, 5  ;;  %v462_v30 = vshll.u32 %v3175_v17, 16  ;;  %2663 = vmatprep.subr.bf16.mxu1 %v3023_v1  ;;  %v2356_v31 = vcombine.low %v282_v9, %v3172_v12  ;;  %v454_v34 = vrot.slane %v452_v24, 5  ;;  %v3209_v58 = vld [vmem:[%s3153_s16 + $0x34] sm:$0xf]  ;;  %s2132_s17 = sadd.f32 128.0, %s4122_s15 }
  0x29   : > { %v474_v32 = vrot.slane %v473_v22, 4  ;;  %v484_v33 = vrot.slane %v483_v23, 4  ;;  %v458_v35 = vrot.slane %v456_v25, 4  ;;  %v419_v41 = vshrl.u32 %v280_v26, 16  ;;  %v3215_v63 = vld [vmem:[%s3153_s16 + $0x38] sm:$0x1] }
  0x2a   : > { %v449_v37 = vor.u32 %v448_v29, %v445_v28  ;;  %v464_v38 = vrot.slane %v462_v30, 5  ;;  %v646_v39 = vsel %vm516_vm2, %v2356_v31, 0  ;;  %v422_v45 = vshll.u32 %v280_v26, 16  ;;  %v3222_v11 = vld [vmem:[%s3153_s16 + $0x24] sm:$0xf]  ;;  %s2147_s30 = smul.f32 128.0, %s4122_s15 }
  0x2b   : > { %v479_v42 = vsel %vm3183_vm5, %v474_v32, %v478_v15  ;;  %v489_v43 = vsel %vm3183_vm5, %v484_v33, %v488_v18  ;;  %v459_v44 = vor.u32 %v458_v35, %v454_v34  ;;  %v421_v48 = vrot.slane %v419_v41, 4  ;;  %v3226_v16 = vld [vmem:[%s3153_s16 + $0x28] sm:$0xf]  ;;  %v3236_v29 = vld [vmem:[%s3153_s16 + $0x2c] sm:$0x1]  ;;  %p2553_p0 = scmp.ne.s32.totalorder %s3004_s21, 1 }
  0x2c   : > { %v2348_v46 = vcombine.low %v479_v42, %v489_v43  ;;  %v450_v47 = vrot.slane %v449_v37, 4  ;;  %v428_v49 = vshll.u32 %v3191_v36, 16  ;;  %v424_v51 = vrot.slane %v422_v45, 5  ;;  %v3242_v35 = vld [vmem:[%s3153_s16 + $0x18] sm:$0xf] }
  0x2d   : > { %v460_v50 = vrot.slane %v459_v44, 4  ;;  %v432_v52 = vshrl.u32 %v3191_v36, 16  ;;  %v438_v53 = vshll.u32 %v3195_v40, 16  ;;  %v2355_v62 = vcombine.low %v280_v26, %v3191_v36  ;;  %v3246_v42 = vld [vmem:[%s3153_s16 + $0x1c] sm:$0xf] }
  0x2e   : > { %v542_v55 = vsel %vm516_vm2, %v2348_v46, 0  ;;  %v455_v56 = vsel %vm3183_vm5, %v450_v47, %v454_v34  ;;  %v430_v57 = vrot.slane %v428_v49, 5  ;;  %v425_v60 = vor.u32 %v424_v51, %v421_v48 }
  0x2f   : > { %2642 = vmatpush3.bf16.xpose.msra.mxu0 %v542_v55  ;;  %v465_v59 = vsel %vm3183_vm5, %v460_v50, %v464_v38  ;;  %2664 = vmatpush3.bf16.xpose.msra.mxu1 %v646_v39  ;;  %v434_v61 = vrot.slane %v432_v52, 4  ;;  %v440_v2 = vrot.slane %v438_v53, 5  ;;  %v395_v5 = vshrl.u32 %v278_v54, 16  ;;  %v3257_v55 = vld [vmem:[%s3153_s16 + $0xc] sm:$0xf] }
  0x30   : > { %2643 = vmatprep.subr.bf16.mxu0 %v3023_v1  ;;  %v2347_v0 = vcombine.low %v455_v56, %v465_v59  ;;  %2665 = vmatprep.subr.bf16.mxu1 %v3023_v1  ;;  %v398_v6 = vshll.u32 %v278_v54, 16  ;;  %v426_v7 = vrot.slane %v425_v60, 4  ;;  %v404_v9 = vshll.u32 %v3209_v58, 16  ;;  %v3264_v59 = vld [vmem:[%s3153_s16 + $0x20] sm:$0x1] }
  0x31   : > { %v435_v8 = vor.u32 %v434_v61, %v430_v57  ;;  %v408_v10 = vshrl.u32 %v3209_v58, 16  ;;  %v397_v13 = vrot.slane %v395_v5, 4  ;;  %v414_v15 = vshll.u32 %v3215_v63, 16 }
  0x32   : > { %v400_v14 = vrot.slane %v398_v6, 5  ;;  %v643_v19 = vsel %vm516_vm2, %v2355_v62, 0  ;;  %v406_v20 = vrot.slane %v404_v9, 5  ;;  %v539_v22 = vsel %vm516_vm2, %v2347_v0, 0 }
  0x33   : > { %v436_v18 = vrot.slane %v435_v8, 4  ;;  %v410_v21 = vrot.slane %v408_v10, 4  ;;  %v431_v23 = vsel %vm3183_vm5, %v426_v7, %v430_v57  ;;  %v371_v25 = vshrl.u32 %v3222_v11, 16  ;;  %v3270_v10 = vld [vmem:[%s3153_s16 + $0x10] sm:$0xf] }
  0x34   : > { %v401_v24 = vor.u32 %v400_v14, %v397_v13  ;;  %v374_v30 = vshll.u32 %v3222_v11, 16  ;;  %v380_v31 = vshll.u32 %v3226_v16, 16  ;;  %v416_v32 = vrot.slane %v414_v15, 5 }
  0x35   : > { %v441_v26 = vsel %vm3183_vm5, %v436_v18, %v440_v2  ;;  %v411_v28 = vor.u32 %v410_v21, %v406_v20  ;;  %v2354_v33 = vcombine.low %v278_v54, %v3209_v58  ;;  %v373_v34 = vrot.slane %v371_v25, 4  ;;  %v3282_v21 = vld [vmem:[%s3153_s16 + $0x14] sm:$0x1] }
  0x36   : > { %v2346_v37 = vcombine.low %v431_v23, %v441_v26  ;;  %v376_v38 = vrot.slane %v374_v30, 5  ;;  %v382_v39 = vrot.slane %v380_v31, 5  ;;  %v384_v41 = vshrl.u32 %v3226_v16, 16 }
  0x37   : > { %2644 = vmatpush3.bf16.xpose.msra.mxu0 %v539_v22  ;;  %2666 = vmatpush3.bf16.xpose.msra.mxu1 %v643_v19  ;;  %v402_v43 = vrot.slane %v401_v24, 4  ;;  %v412_v44 = vrot.slane %v411_v28, 4  ;;  %v390_v47 = vshll.u32 %v3236_v29, 16  ;;  %v347_v48 = vshrl.u32 %v3242_v35, 16 }
  0x38   : > { %2645 = vmatprep.subr.bf16.mxu0 %v3023_v1  ;;  %2667 = vmatprep.subr.bf16.mxu1 %v3023_v1  ;;  %v377_v45 = vor.u32 %v376_v38, %v373_v34  ;;  %v386_v46 = vrot.slane %v384_v41, 4  ;;  %v640_v49 = vsel %vm516_vm2, %v2354_v33, 0  ;;  %v350_v50 = vshll.u32 %v3242_v35, 16  ;;  %v3291_v33 = vld [vmem:[%s3153_s16] sm:$0xf] }
  0x39   : > { %v536_v51 = vsel %vm516_vm2, %v2346_v37, 0  ;;  %v349_v53 = vrot.slane %v347_v48, 4  ;;  %v356_v54 = vshll.u32 %v3246_v42, 16  ;;  %v407_v56 = vsel %vm3183_vm5, %v402_v43, %v406_v20  ;;  %v698_v41 = vld [vmem:[%s3153_s16 + $0x54] sm:$0xe] }
  0x3a   : > { %v387_v52 = vor.u32 %v386_v46, %v382_v39  ;;  %v417_v57 = vsel %vm3183_vm5, %v412_v44, %v416_v32  ;;  %v352_v60 = vrot.slane %v350_v50, 5  ;;  %v360_v61 = vshrl.u32 %v3246_v42, 16 }
  0x3b   : > { %v378_v62 = vrot.slane %v377_v45, 4  ;;  %v392_v2 = vrot.slane %v390_v47, 5  ;;  %v358_v5 = vrot.slane %v356_v54, 5  ;;  %v323_v7 = vshrl.u32 %v3257_v55, 16 }
  0x3c   : > { %v388_v0 = vrot.slane %v387_v52, 4  ;;  %v362_v6 = vrot.slane %v360_v61, 4  ;;  %v353_v8 = vor.u32 %v352_v60, %v349_v53  ;;  %v366_v9 = vshll.u32 %v3264_v59, 16 }
  0x3d   : > { %v326_v13 = vshll.u32 %v3257_v55, 16  ;;  %v2345_v14 = vcombine.low %v407_v56, %v417_v57  ;;  %v2353_v15 = vcombine.low %v3222_v11, %v3226_v16  ;;  %v383_v19 = vsel %vm3183_vm5, %v378_v62, %v382_v39  ;;  %v3297_v39 = vld [vmem:[%s3153_s16 + $0x4] sm:$0xf] }
  0x3e   : > { %v363_v18 = vor.u32 %v362_v6, %v358_v5  ;;  %v393_v20 = vsel %vm3183_vm5, %v388_v0, %v392_v2  ;;  %v325_v22 = vrot.slane %v323_v7, 4  ;;  %v332_v24 = vshll.u32 %v3270_v10, 16  ;;  %v696_v2 = vld [vmem:[%s3153_s16 + $0x3c] sm:$0xe] }
  0x3f   : > { %2646 = vmatpush3.bf16.xpose.msra.mxu0 %v536_v51  ;;  %2668 = vmatpush3.bf16.xpose.msra.mxu1 %v640_v49  ;;  %v328_v23 = vrot.slane %v326_v13, 5  ;;  %v336_v25 = vshrl.u32 %v3270_v10, 16  ;;  %v354_v26 = vrot.slane %v353_v8, 4  ;;  %v368_v11 = vrot.slane %v366_v9, 5  ;;  %v697_v49 = vld [vmem:[%s3153_s16 + $0x48] sm:$0xe] }
  0x40   : > { %2647 = vmatprep.subr.bf16.mxu0 %v3023_v1  ;;  %2669 = vmatprep.subr.bf16.mxu1 %v3023_v1  ;;  %v364_v28 = vrot.slane %v363_v18, 4  ;;  %v2352_v30 = vcombine.low %v3242_v35, %v3246_v42  ;;  %v533_v31 = vsel %vm516_vm2, %v2345_v14, 0  ;;  %v637_v32 = vsel %vm516_vm2, %v2353_v15, 0  ;;  %v695_v18 = vld [vmem:[%s3153_s16 + $0x30] sm:$0xe] }
  0x41   : > { %v2344_v34 = vcombine.low %v383_v19, %v393_v20  ;;  %v342_v37 = vshll.u32 %v3282_v21, 16  ;;  %v2351_v38 = vcombine.low %v3257_v55, %v3270_v10  ;;  %v329_v43 = vor.u32 %v328_v23, %v325_v22 }
  0x42   : > { %v3300_v35 = vrot.slane %v332_v24, 5  ;;  %v338_v44 = vrot.slane %v336_v25, 4  ;;  %v772_v45 = vrot.slane %v3164_v4, 5  ;;  %v359_v46 = vsel %vm3183_vm5, %v354_v26, %v358_v5  ;;  %v3332_v5 = vld [vmem:[%s3153_s16 + $0x8] sm:$0x1] }
  0x43   : > { %v369_v47 = vsel %vm3183_vm5, %v364_v28, %v368_v11  ;;  %v634_v48 = vsel %vm516_vm2, %v2352_v30, 0  ;;  %v299_v50 = vshrl.u32 %v3291_v33, 16  ;;  %v302_v4 = vshll.u32 %v3291_v33, 16 }
  0x44   : > { %v308_v51 = vshll.u32 %v3297_v39, 16  ;;  %v2366_v53 = vrot.slane %v698_v41, 9  ;;  %v530_v54 = vsel %vm516_vm2, %v2344_v34, 0  ;;  %v3321_v55 = vrot.slane %v342_v37, 5 }
  0x45   : > { %v3324_v56 = vsel %vm516_vm2, %v2351_v38, 0  ;;  %v769_v57 = vrot.slane %v3161_v3, 5  ;;  %v2343_v60 = vcombine.low %v359_v46, %v369_v47  ;;  %v3327_v61 = vrot.slane %v329_v43, 4 }
  0x46   : > { %v339_v62 = vor.u32 %v338_v44, %v3300_v35  ;;  %v2365_v0 = vrot.slane %v697_v49, 9  ;;  %v762_v8 = vrot.slane %v3172_v12, 5  ;;  %v765_v9 = vrot.slane %v3175_v17, 5  ;;  %v692_v49 = vld [vmem:[%s3153_s16 + $0xc] sm:$0xe] }
  0x47   : > { %2648 = vmatpush3.bf16.xpose.msra.mxu0 %v533_v31  ;;  %2670 = vmatpush3.bf16.xpose.msra.mxu1 %v637_v32  ;;  %v3336_v6 = vsel %vm3316_vm8, %v2366_v53, %v769_v57  ;;  %v771_v7 = vrot.slane %v769_v57, 4  ;;  %v301_v13 = vrot.slane %v299_v50, 4  ;;  %v304_v3 = vrot.slane %v302_v4, 5  ;;  %v694_v31 = vld [vmem:[%s3153_s16 + $0x24] sm:$0xe] }
  0x48   : > { %2649 = vmatprep.subr.bf16.mxu0 %v3023_v1  ;;  %2671 = vmatprep.subr.bf16.mxu1 %v3023_v1  ;;  %v3340_v14 = vrot.slane %v308_v51, 5  ;;  %v312_v15 = vshrl.u32 %v3297_v39, 16  ;;  %v3350_v20 = vsel %vm3316_vm8, %v2365_v0, %v762_v8  ;;  %v764_v22 = vrot.slane %v762_v8, 4 }
  0x49   : > { %v3346_v19 = vsel %vm3316_vm8, %v771_v7, %v772_v45  ;;  %v2364_v12 = vrot.slane %v696_v2, 9  ;;  %v318_v17 = vshll.u32 %v3332_v5, 16  ;;  %v755_v24 = vrot.slane %v3191_v36, 5 }
  0x4a   : > { %v2375_v23 = vcombine.low %v3336_v6, %v3346_v19  ;;  %v758_v25 = vrot.slane %v3195_v40, 5  ;;  %v527_v26 = vsel %vm516_vm2, %v2343_v60, 0  ;;  %v335_v28 = vsel %vm3183_vm5, %v3327_v61, %v3300_v35  ;;  %v693_v35 = vld [vmem:[%s3153_s16 + $0x18] sm:$0xe]  ;;  %v691_v60 = vld [vmem:[%s3153_s16] sm:$0xe] }
  0x4b   : > { %v3364_v11 = vsel %vm3316_vm8, %v764_v22, %v765_v9  ;;  %v2363_v30 = vrot.slane %v695_v18, 9  ;;  %v340_v36 = vrot.slane %v339_v62, 4  ;;  %v3373_v32 = vsel %vm3316_vm8, %v2364_v12, %v755_v24 }
  0x4c   : > { %v2374_v40 = vcombine.low %v3350_v20, %v3364_v11  ;;  %v757_v34 = vrot.slane %v755_v24, 4  ;;  %v314_v37 = vrot.slane %v312_v15, 4  ;;  %v2350_v38 = vcombine.low %v3291_v33, %v3297_v39  ;;  %v2912_v11 = vld [vmem:[%s3153_s16 + $0x30] sm:$0xff]  }
  0x4d   : > { %v748_v41 = vrot.slane %v3209_v58, 5  ;;  %v751_v43 = vrot.slane %v3215_v63, 5  ;;  %v305_v44 = vor.u32 %v304_v3, %v301_v13  ;;  %v2362_v46 = vrot.slane %v694_v31, 9 }
  0x4e   : > { %v3382_v45 = vsel %vm3316_vm8, %v757_v34, %v758_v25  ;;  %v741_v47 = vrot.slane %v3226_v16, 5  ;;  %v744_v63 = vrot.slane %v3236_v29, 5  ;;  %v345_v50 = vsel %vm3183_vm5, %v340_v36, %v3321_v55 }
  0x4f   : > { %2650 = vmatpush3.bf16.xpose.msra.mxu0 %v530_v54  ;;  %2672 = vmatpush3.bf16.xpose.msra.mxu1 %v634_v48  ;;  %v2373_v48 = vcombine.low %v3373_v32, %v3382_v45  ;;  %v3389_v33 = vsel %vm3316_vm8, %v2363_v30, %v748_v41  ;;  %v750_v58 = vrot.slane %v748_v41, 4  ;;  %v2361_v51 = vrot.slane %v693_v35, 9  ;;  %v2340_v35 = vld [vmem:[%s4187_s1 + $0x2] sm:$0x3]  ;;  %v2913_v32 = vld [vmem:[%s3153_s16 + $0x24] sm:$0xff]  }
  0x50   : > { %2651 = vmatprep.subr.bf16.mxu0 %v3023_v1  ;;  %2673 = vmatprep.subr.bf16.mxu1 %v3023_v1  ;;  %v3398_v4 = vsel %vm3316_vm8, %v2362_v46, %v741_v47  ;;  %v743_v16 = vrot.slane %v741_v47, 4  ;;  %v315_v53 = vor.u32 %v314_v37, %v3340_v14  ;;  %v734_v57 = vrot.slane %v3246_v42, 5  ;;  %v2908_v37 = vld [vmem:[%s3153_s16 + $0x60] sm:$0xff]   ;;  %v2910_v47 = vld [vmem:[%s3153_s16 + $0x48] sm:$0xff]  }
  0x51   : > { %v3403_v54 = vsel %vm3316_vm8, %v750_v58, %v751_v43  ;;  %v737_v29 = vrot.slane %v3264_v59, 5  ;;  %v320_v61 = vrot.slane %v318_v17, 5  ;;  %v2360_v0 = vrot.slane %v692_v49, 9  ;;  %v2909_v43 = vld [vmem:[%s3153_s16 + $0x54] sm:$0xff]   ;;  %v2426_v45 = vld [vmem:[%s3153_s16 + $0x60] sm:$0xf] }
  0x52   : > { %v2372_v55 = vcombine.low %v3389_v33, %v3403_v54  ;;  %v3412_v62 = vsel %vm3316_vm8, %v743_v16, %v744_v63  ;;  %v3419_v42 = vsel %vm3316_vm8, %v2361_v51, %v734_v57  ;;  %v736_v59 = vrot.slane %v734_v57, 4  ;;  %v2914_v54 = vld [vmem:[%s3153_s16 + $0x18] sm:$0xff]   ;;  %v2428_v57 = vld [vmem:[%s3153_s16 + $0x68] sm:$0x1] }
  0x53   : > { %v2371_v2 = vcombine.low %v3398_v4, %v3412_v62  ;;  %v727_v7 = vrot.slane %v3270_v10, 5  ;;  %v2342_v8 = vcombine.low %v335_v28, %v345_v50  ;;  %v306_v9 = vrot.slane %v305_v44, 4  ;;  %v2423_v62 = vld [vmem:[%s3153_s16 + $0x54] sm:$0xf] }
  0x54   : > { %v730_v13 = vrot.slane %v3282_v21, 5  ;;  %v2359_v3 = vrot.slane %v691_v60, 9  ;;  %v3427_v15 = vsel %vm3316_vm8, %v736_v59, %v737_v29  ;;  %v720_v12 = vrot.slane %v3297_v39, 5 }
  0x55   : > { %v3431_v18 = vsel %vm3316_vm8, %v2360_v0, %v727_v7  ;;  %v729_v22 = vrot.slane %v727_v7, 4  ;;  %v2370_v10 = vcombine.low %v3419_v42, %v3427_v15  ;;  %v723_v17 = vrot.slane %v3332_v5, 5  ;;  %v2446_v0 = vld [vmem:[%s3153_s16 + $0x60] sm:$0xe]  ;;  %v2915_v42 = vld [vmem:[%s3153_s16 + $0xc] sm:$0xff]  }
  0x56   : > { %v628_v21 = vsel %vm516_vm2, %v2350_v38, 0  ;;  %v524_v25 = vsel %vm516_vm2, %v2342_v8, 0  ;;  %v3447_v28 = vsel %vm3316_vm8, %v2359_v3, %v720_v12  ;;  %v722_v30 = vrot.slane %v720_v12, 4 }
  0x57   : > { %2652 = vmatpush3.bf16.xpose.msra.mxu0 %v527_v26  ;;  %2674 = vmatpush3.bf16.xpose.msra.mxu1 %v3324_v56  ;;  %v316_v56 = vrot.slane %v315_v53, 4  ;;  %v3440_v24 = vsel %vm3316_vm8, %v729_v22, %v730_v13  ;;  %v311_v39 = vsel %vm3183_vm5, %v306_v9, %v3340_v14  ;;  %v286_v14 = vld [vmem:[%s4187_s1] sm:$0x3]  ;;  %v955_v41 = vsel %vm516_vm2, %v2908_v37, 0  ;;  %v3531_v13 = vld [vmem:[%s3153_s16 + $0x58] sm:$0xf] }
  0x58   : > { %2653 = vmatprep.subr.bf16.mxu0 %v3023_v1  ;;  %2675 = vmatprep.subr.bf16.mxu1 %v3023_v1  ;;  %v2369_v26 = vcombine.low %v3431_v18, %v3440_v24  ;;  %v3456_v31 = vsel %vm3316_vm8, %v722_v30, %v723_v17  ;;  %v825_v44 = vsel %vm516_vm2, %v2375_v23, 0  ;;  %v952_v46 = vsel %vm516_vm2, %v2909_v43, 0  ;;  %v2911_v23 = vld [vmem:[%s3153_s16 + $0x3c] sm:$0xff]   ;;  %v3538_v30 = vld [vmem:[%s3153_s16 + $0x4c] sm:$0xf] }
  0x59   : > { %v321_v5 = vsel %vm3183_vm5, %v316_v56, %v320_v61  ;;  %v2368_v36 = vcombine.low %v3447_v28, %v3456_v31  ;;  %v822_v6 = vsel %vm516_vm2, %v2374_v40, 0  ;;  %v949_v19 = vsel %vm516_vm2, %v2910_v47, 0  ;;  %v3564_v24 = vld [vmem:[%s3153_s16 + $0x40] sm:$0xf]  ;;  %v2444_v31 = vld [vmem:[%s3153_s16 + $0x48] sm:$0xe] }
  0x5a   : > { %v2341_v34 = vcombine.low %v311_v39, %v321_v5  ;;  %v819_v58 = vsel %vm516_vm2, %v2373_v48, 0  ;;  %v946_v20 = vsel %vm516_vm2, %v2911_v23, 0  ;;  %v816_v40 = vsel %vm516_vm2, %v2372_v55, 0  ;;  %v2427_v48 = vld [vmem:[%s3153_s16 + $0x64] sm:$0xf] }
  0x5b   : > { %v943_v63 = vsel %vm516_vm2, %v2912_v11, 0  ;;  %v813_v33 = vsel %vm516_vm2, %v2371_v2, 0  ;;  %v940_v49 = vsel %vm516_vm2, %v2913_v32, 0  ;;  %v1191_v50 = vshrl.u32 %v2426_v45, 16 }
  0x5c   : > { %v521_v38 = vsel %vm516_vm2, %v2341_v34, 0  ;;  %v1194_v16 = vshll.u32 %v2426_v45, 16  ;;  %v1200_v51 = vshll.u32 %v2427_v48, 16  ;;  %v1204_v53 = vshrl.u32 %v2427_v48, 16  ;;  %v2417_v45 = vld [vmem:[%s3153_s16 + $0x3c] sm:$0xf] }
  0x5d   : > { %v1193_v4 = vrot.slane %v1191_v50, 4  ;;  %v1391_v55 = vrot.slane %v2427_v48, 5  ;;  %v810_v2 = vsel %vm516_vm2, %v2370_v10, 0  ;;  %v937_v59 = vsel %vm516_vm2, %v2914_v54, 0 }
  0x5e   : > { %v1196_v29 = vrot.slane %v1194_v16, 5  ;;  %v1202_v60 = vrot.slane %v1200_v51, 5  ;;  %v1206_v61 = vrot.slane %v1204_v53, 4  ;;  %v1210_v7 = vshll.u32 %v2428_v57, 16 }
  0x5f   : > { %2654 = vmatpush3.bf16.xpose.msra.mxu0 %v524_v25  ;;  %2676 = vmatpush3.bf16.xpose.msra.mxu1 %v628_v21  ;;  %v1167_v3 = vshrl.u32 %v2423_v62, 16  ;;  %v1170_v56 = vshll.u32 %v2423_v62, 16  ;;  %v2454_v22 = vrot.slane %v2446_v0, 9  ;;  %v1393_v12 = vrot.slane %v1391_v55, 4  ;;  %v2420_v21 = vld [vmem:[%s3153_s16 + $0x48] sm:$0xf] }
  0x60   : > { %2655 = vmatprep.subr.bf16.mxu0 %v3023_v1  ;;  %2701 = vmatprep.subr.bf16.mxu1 %v3023_v1  ;;  %v1197_v8 = vor.u32 %v1196_v29, %v1193_v4  ;;  %v1207_v9 = vor.u32 %v1206_v61, %v1202_v60  ;;  %v1394_v17 = vrot.slane %v2428_v57, 5  ;;  %v1212_v15 = vrot.slane %v1210_v7, 5 }
  0x61   : > { %v1176_v10 = vshll.u32 %v3531_v13, 16  ;;  %v1180_v25 = vshrl.u32 %v3531_v13, 16  ;;  %v1169_v34 = vrot.slane %v1167_v3, 4  ;;  %v1172_v37 = vrot.slane %v1170_v56, 5  ;;  %v2414_v3 = vld [vmem:[%s3153_s16 + $0x30] sm:$0xf] }
  0x62   : > { %v1198_v39 = vrot.slane %v1197_v8, 4  ;;  %v1208_v5 = vrot.slane %v1207_v9, 4  ;;  %v1384_v43 = vrot.slane %v3531_v13, 5  ;;  %v1152_v47 = vshll.u32 %v3538_v30, 16 }
  0x63   : > { %v934_v23 = vsel %vm516_vm2, %v2915_v42, 0  ;;  %v1119_v4 = vshrl.u32 %v2417_v45, 16  ;;  %v1122_v29 = vshll.u32 %v2417_v45, 16  ;;  %v1132_v62 = vshrl.u32 %v3564_v24, 16 }
  0x64   : > { %v1203_v11 = vsel %vm3183_vm5, %v1198_v39, %v1202_v60  ;;  %v3569_v51 = vrot.slane %v1152_v47, 5  ;;  %v804_v60 = vsel %vm516_vm2, %v2368_v36, 0  ;;  %v2395_v36 = vld [vmem:[%s4187_s1 + $0x6] sm:$0x3]  ;;  %v1377_v13 = vrot.slane %v3538_v30, 5 }
  0x65   : > { %v2452_v42 = vrot.slane %v2444_v31, 9  ;;  %v1370_v39 = vrot.slane %v3564_v24, 5 }
  0x66   : > { %2678 = vmatmul.mubr.msk.bf16.vlgmr.msra.gmra.mxu1 %vm516_vm2, %v286_v14  ;;  %v1392_v14 = vsel %vm3316_vm8, %v2454_v22, %v1391_v55  ;;  %v1128_v55 = vshll.u32 %v3564_v24, 16 }
  0x67   : > { %2656 = vmatpush3.bf16.xpose.msra.mxu0 %v521_v38  ;;  %2702 = vmatpush3.bf16.xpose.msra.mxu1 %v955_v41  ;;  %v1395_v38 = vsel %vm3316_vm8, %v1393_v12, %v1394_v17  ;;  %v2425_v41 = vld [vmem:[%s3153_s16 + $0x5c] sm:$0x1]  ;;  %v2419_v12 = vld [vmem:[%s3153_s16 + $0x44] sm:$0x1]  ;;  %v1121_v17 = vrot.slane %v1119_v4, 4 }
  0x68   : > { %2681 = vmatprep.subr.bf16.mxu0 %v3023_v1  ;;  %2703 = vmatprep.subr.bf16.mxu1 %v3023_v1  ;;  %v1186_v32 = vshll.u32 %v2425_v41, 16  ;;  %v2463_v48 = vcombine.low %v1392_v14, %v1395_v38  ;;  %v1387_v18 = vrot.slane %v2425_v41, 5  ;;  %v1095_v14 = vshrl.u32 %v2414_v3, 16 }
  0x69   : > { %2717 = vmatprep.mubr.msk.bf16.mxu1 %vm3024_vm3, %v3023_v1 }
  0x6a   : > { %v3578_v61 = vrot.slane %v1186_v32, 5  ;;  %v1447_v0 = vsel %vm516_vm2, %v2463_v48, 0  ;;  %v1097_v32 = vrot.slane %v1095_v14, 4  ;;  %v2367_v48 = vld [vmem:[%s4187_s1 + $0x4] sm:$0x3] }
  0x6e   : > { %2658 = vmatmul.mubr.msk.bf16.vlgmr.msra.gmra.mxu0 %vm516_vm2, %v2340_v35  ;;  %v2445_v35 = vld [vmem:[%s3153_s16 + $0x54] sm:$0xe] }
  0x6f   : > { %2682 = vmatpush3.bf16.xpose.msra.mxu0 %v825_v44  ;;  %2704 = vmatpush3.bf16.xpose.msra.mxu1 %v952_v46  ;;  %v1143_v44 = vshrl.u32 %v2420_v21, 16  ;;  %v1146_v46 = vshll.u32 %v2420_v21, 16  ;;  %v1124_v21 = vrot.slane %v1122_v29, 5 }
  0x70   : > { %2683 = vmatprep.subr.bf16.mxu0 %v3023_v1  ;;  %2705 = vmatprep.subr.bf16.mxu1 %v3023_v1 }
  0x71   : > { %2697 = vmatprep.mubr.msk.bf16.mxu0 %vm3024_vm3, %v3023_v1  ;;  %v1145_v50 = vrot.slane %v1143_v44, 4  ;;  %v1148_v16 = vrot.slane %v1146_v46, 5  ;;  %v1125_v44 = vor.u32 %v1124_v21, %v1121_v17  ;;  %v1138_v46 = vshll.u32 %v2419_v12, 16 }
  0x73   : > { %v1149_v8 = vor.u32 %v1148_v16, %v1145_v50  ;;  %v1140_v50 = vrot.slane %v1138_v46, 5 }
  0x75   : > { %v1150_v38 = vrot.slane %v1149_v8, 4 }
  0x77   : > { %2684 = vmatpush3.bf16.xpose.msra.mxu0 %v822_v6  ;;  %2706 = vmatpush3.bf16.xpose.msra.mxu1 %v949_v19  ;;  %v1156_v6 = vshrl.u32 %v3538_v30, 16  ;;  %v807_v19 = vsel %vm516_vm2, %v2369_v26, 0  ;;  %v3567_v26 = vld [vmem:[%s3153_s16 + $0x50] sm:$0x1]  ;;  %v1098_v30 = vshll.u32 %v2414_v3, 16 }
  0x78   : > { %2685 = vmatprep.subr.bf16.mxu0 %v3023_v1  ;;  %2707 = vmatprep.subr.bf16.mxu1 %v3023_v1  ;;  %v1162_v28 = vshll.u32 %v3567_v26, 16 }
  0x79   : > { %v1158_v53 = vrot.slane %v1156_v6, 4  ;;  %v1373_v6 = vrot.slane %v2419_v12, 5  ;;  %v1100_v45 = vrot.slane %v1098_v30, 5 }
  0x7b   : > { %v1159_v9 = vor.u32 %v1158_v53, %v3569_v51  ;;  %v2416_v53 = vld [vmem:[%s3153_s16 + $0x38] sm:$0x1] }
  0x7c   : > { %v1114_v8 = vshll.u32 %v2416_v53, 16 }
  0x7d   : > { %v1160_v41 = vrot.slane %v1159_v9, 4 }
  0x7e   : > { %v3677_v30 = vrot.slane %v1114_v8, 5 }
  0x7f   : > { %2686 = vmatpush3.bf16.xpose.msra.mxu0 %v819_v58  ;;  %2708 = vmatpush3.bf16.xpose.msra.mxu1 %v946_v20  ;;  %v3556_v58 = vrot.slane %v1176_v10, 5  ;;  %v1182_v20 = vrot.slane %v1180_v25, 4  ;;  %v1134_v10 = vrot.slane %v1132_v62, 4  ;;  %v2443_v25 = vld [vmem:[%s3153_s16 + $0x3c] sm:$0xe] }
  0x80   : > { %2687 = vmatprep.subr.bf16.mxu0 %v3023_v1  ;;  %2709 = vmatprep.subr.bf16.mxu1 %v3023_v1  ;;  %v2451_v47 = vrot.slane %v2443_v25, 9 }
  0x81   : > { %v1183_v57 = vor.u32 %v1182_v20, %v3556_v58 }
  0x82   : > { %v1371_v16 = vsel %vm3316_vm8, %v2451_v47, %v1370_v39  ;;  %v3692_v47 = vld [vmem:[%s3153_s16 + $0x74] sm:$0x1] }
  0x83   : > { %v1184_v22 = vrot.slane %v1183_v57, 4 }
  0x87   : > { %2688 = vmatpush3.bf16.xpose.msra.mxu0 %v816_v40  ;;  %2710 = vmatpush3.bf16.xpose.msra.mxu1 %v943_v63  ;;  %v1213_v40 = vsel %vm3183_vm5, %v1208_v5, %v1212_v15  ;;  %v1173_v63 = vor.u32 %v1172_v37, %v1169_v34  ;;  %v3599_v15 = vrot.slane %v1128_v55, 5  ;;  %v1164_v34 = vrot.slane %v1162_v28, 5  ;;  %v3604_v37 = vld [vmem:[%s3153_s16 + $0x34] sm:$0xf] }
  0x88   : > { %2689 = vmatprep.subr.bf16.mxu0 %v3023_v1  ;;  %2711 = vmatprep.subr.bf16.mxu1 %v3023_v1  ;;  %v2437_v54 = vcombine.low %v1203_v11, %v1213_v40  ;;  %v1104_v20 = vshll.u32 %v3604_v37, 16  ;;  %v1108_v11 = vshrl.u32 %v3604_v37, 16  ;;  %v1101_v55 = vor.u32 %v1100_v45, %v1097_v32 }
  0x89   : > { %v1165_v24 = vsel %vm3183_vm5, %v1160_v41, %v1164_v34  ;;  %v1363_v62 = vrot.slane %v3604_v37, 5  ;;  %v3684_v41 = vld [vmem:[%s3153_s16 + $0x70] sm:$0xf] }
  0x8a   : > { %v1265_v56 = vsel %vm516_vm2, %v2437_v54, 0  ;;  %v2411_v54 = vld [vmem:[%s3153_s16 + $0x24] sm:$0xf]  ;;  %v3641_v4 = vrot.slane %v1104_v20, 5  ;;  %v1110_v29 = vrot.slane %v1108_v11, 4  ;;  %v3660_v17 = vrot.slane %v1101_v55, 4 }
  0x8b   : > { %v1071_v28 = vshrl.u32 %v2411_v54, 16  ;;  %v1074_v31 = vshll.u32 %v2411_v54, 16  ;;  %v1365_v21 = vrot.slane %v1363_v62, 4  ;;  %v2408_v20 = vld [vmem:[%s3153_s16 + $0x18] sm:$0xf] }
  0x8c   : > { %v1111_v3 = vor.u32 %v1110_v29, %v3641_v4  ;;  %v3704_v11 = vld [vmem:[%s3153_s16 + $0x64] sm:$0xf]  ;;  %v1047_v54 = vshrl.u32 %v2408_v20, 16  ;;  %v3735_v55 = vld [vmem:[%s3153_s16 + $0x5c] sm:$0x1] }
  0x8d   : > { %v1076_v34 = vrot.slane %v1074_v31, 5 }
  0x8f   : > { %2690 = vmatpush3.bf16.xpose.msra.mxu0 %v813_v33  ;;  %2712 = vmatpush3.bf16.xpose.msra.mxu1 %v940_v49  ;;  %v2453_v33 = vrot.slane %v2445_v35, 9  ;;  %v1386_v49 = vrot.slane %v1384_v43, 4  ;;  %v1380_v35 = vrot.slane %v3567_v26, 5  ;;  %v1126_v26 = vrot.slane %v1125_v44, 4 }
  0x90   : > { %2691 = vmatprep.subr.bf16.mxu0 %v3023_v1  ;;  %2713 = vmatprep.subr.bf16.mxu1 %v3023_v1 }
  0x91   : > { %v1388_v7 = vsel %vm3316_vm8, %v1386_v49, %v1387_v18  ;;  %v1378_v49 = vsel %vm3316_vm8, %v2452_v42, %v1377_v13  ;;  %v1366_v42 = vrot.slane %v2416_v53, 5 }
  0x97   : > { %2692 = vmatpush3.bf16.xpose.msra.mxu0 %v810_v2  ;;  %2714 = vmatpush3.bf16.xpose.msra.mxu1 %v937_v59  ;;  %v3583_v2 = vrot.slane %v1173_v63, 4  ;;  %v1385_v59 = vsel %vm3316_vm8, %v2453_v33, %v1384_v43  ;;  %v1379_v43 = vrot.slane %v1377_v13, 4  ;;  %v1189_v63 = vsel %vm3183_vm5, %v1184_v22, %v3578_v61 }
  0x98   : > { %2693 = vmatprep.subr.bf16.mxu0 %v3023_v1  ;;  %2715 = vmatprep.subr.bf16.mxu1 %v3023_v1  ;;  %v2462_v5 = vcombine.low %v1385_v59, %v1388_v7 }
  0x99   : > { %v1179_v40 = vsel %vm3183_vm5, %v3583_v2, %v3556_v58  ;;  %v1155_v58 = vsel %vm3183_vm5, %v1150_v38, %v3569_v51  ;;  %v1381_v18 = vsel %vm3316_vm8, %v1379_v43, %v1380_v35  ;;  %v2533_v43 = vld [vmem:[%s3153_s16 + $0x60] sm:$0xe]  ;;  %v3687_v35 = vrot.slane %v1111_v3, 4 }
  0x9a   : > { %v1444_v33 = vsel %vm516_vm2, %v2462_v5, 0  ;;  %v2436_v61 = vcombine.low %v1179_v40, %v1189_v63  ;;  %v2435_v2 = vcombine.low %v1155_v58, %v1165_v24  ;;  %v2461_v59 = vcombine.low %v1378_v49, %v1381_v18  ;;  %v2441_v49 = vld [vmem:[%s3153_s16 + $0x24] sm:$0xe]  ;;  %v3716_v24 = vld [vmem:[%s3153_s16 + $0x1c] sm:$0xf] }
  0x9b   : > { %v1073_v5 = vrot.slane %v1071_v28, 4  ;;  %v2013_v40 = vrot.slane %v3684_v41, 5  ;;  %v2016_v63 = vrot.slane %v3692_v47, 5  ;;  %v2006_v58 = vrot.slane %v3704_v11, 5 }
  0x9c   : > { %v1262_v12 = vsel %vm516_vm2, %v2436_v61, 0  ;;  %v1441_v25 = vsel %vm516_vm2, %v2461_v59, 0  ;;  %v1050_v61 = vshll.u32 %v2408_v20, 16  ;;  %v1056_v59 = vshll.u32 %v3716_v24, 16  ;;  %v3782_v20 = vld [vmem:[%s3153_s16 + $0x50] sm:$0x1] }
  0x9d   : > { %v1077_v32 = vor.u32 %v1076_v34, %v1073_v5  ;;  %v2008_v29 = vrot.slane %v2006_v58, 4  ;;  %v1117_v3 = vsel %vm3183_vm5, %v3687_v35, %v3677_v30  ;;  %v2440_v30 = vld [vmem:[%s3153_s16 + $0x18] sm:$0xe]  ;;  %v3771_v35 = vld [vmem:[%s3153_s16 + $0x4c] sm:$0xf] }
  0x9f   : > { %2694 = vmatpush3.bf16.xpose.msra.mxu0 %v807_v19  ;;  %2716 = vmatpush3.bf16.xpose.msra.mxu1 %v934_v23  ;;  %v1135_v19 = vor.u32 %v1134_v10, %v3599_v15  ;;  %v1372_v23 = vrot.slane %v1370_v39, 4  ;;  %v3666_v10 = vsel %vm516_vm2, %v2435_v2, 0  ;;  %v3670_v39 = vld [vmem:[%s3153_s16 + $0x2c] sm:$0x1] }
  0xa0   : > { %2695 = vmatprep.subr.bf16.mxu0 %v3023_v1  ;;  %2741 = vmatprep.subr.bf16.mxu1 %v3023_v1  ;;  %v1090_v45 = vshll.u32 %v3670_v39, 16 }
  0xa1   : > { %v1136_v57 = vrot.slane %v1135_v19, 4  ;;  %v1374_v51 = vsel %vm3316_vm8, %v1372_v23, %v1373_v6  ;;  %v1107_v19 = vsel %vm3183_vm5, %v3660_v17, %v3641_v4  ;;  %v3700_v23 = vsel %vm3316_vm8, %v1365_v21, %v1366_v42 }
  0xa2   : > { %v2460_v7 = vcombine.low %v1371_v16, %v1374_v51  ;;  %v1078_v21 = vrot.slane %v1077_v32, 4  ;;  %v1995_v32 = vrot.slane %v3782_v20, 5 }
  0xa3   : > { %v1141_v13 = vsel %vm3183_vm5, %v1136_v57, %v1140_v50  ;;  %v2015_v50 = vrot.slane %v2013_v40, 4  ;;  %v3727_v57 = vld [vmem:[%s3153_s16 + $0x58] sm:$0xf] }
  0xa4   : > { %v3675_v14 = vsel %vm516_vm2, %v2460_v7, 0  ;;  %v1999_v2 = vrot.slane %v3727_v57, 5  ;;  %v1060_v7 = vshrl.u32 %v3716_v24, 16 }
  0xa6   : > { %2718 = vmatmul.mubr.msk.bf16.vlgmr.msra.gmra.mxu1 %vm516_vm2, %v2395_v36  ;;  %v1131_v36 = vsel %vm3183_vm5, %v1126_v26, %v3599_v15  ;;  %v2534_v15 = vld [vmem:[%s3153_s16 + $0x6c] sm:$0xe] }
  0xa7   : > { %2696 = vmatpush3.bf16.xpose.msra.mxu0 %v804_v60  ;;  %2742 = vmatpush3.bf16.xpose.msra.mxu1 %v1447_v0  ;;  %v2442_v60 = vld [vmem:[%s3153_s16 + $0x30] sm:$0xe]  ;;  %v3646_v0 = vld [vmem:[%s3153_s16 + $0x28] sm:$0xf]  ;;  %v3672_v37 = vcombine.low %v1131_v36, %v1141_v13  ;;  %v2542_v6 = vrot.slane %v2534_v15, 9  ;;  %v2002_v36 = vrot.slane %v3735_v55, 5 }
  0xa8   : > { %2721 = vmatprep.subr.bf16.mxu0 %v3023_v1  ;;  %2743 = vmatprep.subr.bf16.mxu1 %v3023_v1  ;;  %v2450_v9 = vrot.slane %v2442_v60, 9  ;;  %v1084_v22 = vshrl.u32 %v3646_v0, 16  ;;  %v1356_v18 = vrot.slane %v3646_v0, 5  ;;  %v2532_v60 = vld [vmem:[%s3153_s16 + $0x54] sm:$0xe]  ;;  %v2001_v13 = vrot.slane %v1999_v2, 4 }
  0xa9   : > { %2757 = vmatprep.mubr.msk.bf16.mxu1 %vm3024_vm3, %v3023_v1  ;;  %v3720_v26 = vsel %vm3316_vm8, %v2542_v6, %v2013_v40  ;;  %v1359_v15 = vrot.slane %v3670_v39, 5  ;;  %v1256_v39 = vsel %vm516_vm2, %v3672_v37, 0  ;;  %v3779_v6 = vrot.slane %v1056_v59, 5 }
  0xaa   : > { %v3681_v38 = vsel %vm3316_vm8, %v2450_v9, %v1363_v62  ;;  %v1086_v46 = vrot.slane %v1084_v22, 4  ;;  %v3739_v62 = vsel %vm3316_vm8, %v2015_v50, %v2016_v63  ;;  %v1092_v22 = vrot.slane %v1090_v45, 5  ;;  %v2531_v63 = vld [vmem:[%s3153_s16 + $0x48] sm:$0xe] }
  0xab   : > { %v2551_v28 = vcombine.low %v3720_v26, %v3739_v62  ;;  %v1358_v42 = vrot.slane %v1356_v18, 4  ;;  %v3767_v5 = vsel %vm3316_vm8, %v2001_v13, %v2002_v36  ;;  %v1992_v40 = vrot.slane %v3771_v35, 5  ;;  %v2112_v62 = vld [vmem:[%s4188_s2] sm:$0xf] }
  0xac   : > { %v2539_v4 = vrot.slane %v2531_v63, 9 }
  0xad   : > { %v1994_v17 = vrot.slane %v1992_v40, 4 }
  0xae   : > { %2698 = vmatmul.mubr.msk.bf16.vlgmr.msra.gmra.mxu0 %vm516_vm2, %v2367_v48  ;;  %v3710_v48 = vld [vmem:[%s3153_s16 + $0x68] sm:$0x1] }
  0xaf   : > { %2722 = vmatpush3.bf16.xpose.msra.mxu0 %v1265_v56  ;;  %2744 = vmatpush3.bf16.xpose.msra.mxu1 %v1444_v33  ;;  %v1080_v56 = vshll.u32 %v3646_v0, 16  ;;  %v2541_v33 = vrot.slane %v2533_v43, 9  ;;  %v2009_v16 = vrot.slane %v3710_v48, 5  ;;  %v2540_v0 = vrot.slane %v2532_v60, 9 }
  0xb0   : > { %2723 = vmatprep.subr.bf16.mxu0 %v3023_v1  ;;  %2745 = vmatprep.subr.bf16.mxu1 %v3023_v1  ;;  %v1049_v43 = vrot.slane %v1047_v54, 4 }
  0xb1   : > { %2737 = vmatprep.mubr.msk.bf16.mxu0 %vm3024_vm3, %v3023_v1  ;;  %v3689_v44 = vrot.slane %v1080_v56, 5  ;;  %v3731_v51 = vsel %vm3316_vm8, %v2541_v33, %v2006_v58  ;;  %v3747_v31 = vsel %vm3316_vm8, %v2008_v29, %v2009_v16  ;;  %v3755_v9 = vsel %vm3316_vm8, %v2540_v0, %v1999_v2  ;;  %v2405_v58 = vld [vmem:[%s3153_s16 + $0xc] sm:$0xf]  ;;  %v3818_v0 = vld [vmem:[%s3153_s16 + $0x10] sm:$0xf] }
  0xb2   : > { %v2550_v8 = vcombine.low %v3731_v51, %v3747_v31  ;;  %v2459_v56 = vcombine.low %v3681_v38, %v3700_v23  ;;  %v2549_v38 = vcombine.low %v3755_v9, %v3767_v5  ;;  %v1062_v23 = vrot.slane %v1060_v7, 4 }
  0xb3   : > { %v1087_v53 = vor.u32 %v1086_v46, %v3689_v44  ;;  %v1052_v46 = vrot.slane %v1050_v61, 5  ;;  %v1083_v45 = vsel %vm3183_vm5, %v1078_v21, %v3689_v44  ;;  %v2448_v44 = vrot.slane %v2440_v30, 9 }
  0xb4   : > { %v1435_v37 = vsel %vm516_vm2, %v2459_v56, 0  ;;  %v1063_v16 = vor.u32 %v1062_v23, %v3779_v6  ;;  %v1023_v60 = vshrl.u32 %v2405_v58, 16  ;;  %v1026_v2 = vshll.u32 %v2405_v58, 16  ;;  %v3823_v56 = vld [vmem:[%s3153_s16 + $0x40] sm:$0xf] }
  0xb5   : > { %v1088_v34 = vrot.slane %v1087_v53, 4  ;;  %v3813_v53 = vsel %vm3316_vm8, %v1994_v17, %v1995_v32  ;;  %v1036_v23 = vshrl.u32 %v3818_v0, 16  ;;  %v1342_v63 = vrot.slane %v3818_v0, 5 }
  0xb6   : > { %v1826_v58 = vshrl.u32 %v3684_v41, 16  ;;  %v2066_v26 = vsel %vm516_vm2, %v2550_v8, 0 }
  0xb7   : > { %2724 = vmatpush3.bf16.xpose.msra.mxu0 %v1262_v12  ;;  %2746 = vmatpush3.bf16.xpose.msra.mxu1 %v1441_v25  ;;  %v2449_v12 = vrot.slane %v2441_v49, 9  ;;  %v2410_v25 = vld [vmem:[%s3153_s16 + $0x20] sm:$0x1]  ;;  %v1360_v49 = vsel %vm3316_vm8, %v1358_v42, %v1359_v15  ;;  %v3828_v42 = vld [vmem:[%s3153_s16 + $0x44] sm:$0x1]  ;;  %v1985_v15 = vrot.slane %v3823_v56, 5 }
  0xb8   : > { %2725 = vmatprep.subr.bf16.mxu0 %v3023_v1  ;;  %2747 = vmatprep.subr.bf16.mxu1 %v3023_v1  ;;  %v1066_v50 = vshll.u32 %v2410_v25, 16  ;;  %v1352_v29 = vrot.slane %v2410_v25, 5  ;;  %v1988_v30 = vrot.slane %v3828_v42, 5 }
  0xb9   : > { %v1357_v33 = vsel %vm3316_vm8, %v2449_v12, %v1356_v18  ;;  %v3809_v18 = vsel %vm3316_vm8, %v2539_v4, %v1992_v40  ;;  %v1064_v12 = vrot.slane %v1063_v16, 4 }
  0xba   : > { %v2548_v61 = vcombine.low %v3809_v18, %v3813_v53  ;;  %v2458_v7 = vcombine.low %v1357_v33, %v1360_v49  ;;  %v1068_v13 = vrot.slane %v1066_v50, 5  ;;  %v1822_v33 = vshll.u32 %v3684_v41, 16  ;;  %v2407_v50 = vld [vmem:[%s3153_s16 + $0x14] sm:$0x1] }
  0xbc   : > { %v1069_v49 = vsel %vm3183_vm5, %v1064_v12, %v1068_v13  ;;  %v1828_v12 = vrot.slane %v1826_v58, 4  ;;  %v2060_v51 = vsel %vm516_vm2, %v2548_v61, 0  ;;  %v2543_v61 = vld [vmem:[%s4187_s1 + $0x10] sm:$0x3] }
  0xbf   : > { %2726 = vmatpush3.bf16.xpose.msra.mxu0 %v3666_v10  ;;  %2748 = vmatpush3.bf16.xpose.msra.mxu1 %v3675_v14  ;;  %v2433_v10 = vcombine.low %v1107_v19, %v1117_v3  ;;  %v1349_v14 = vrot.slane %v3716_v24, 5  ;;  %v1093_v19 = vsel %vm3183_vm5, %v1088_v34, %v1092_v22  ;;  %v1053_v24 = vor.u32 %v1052_v46, %v1049_v43  ;;  %v2514_v3 = vld [vmem:[%s3153_s16 + $0x6c] sm:$0xf]  ;;  %v2530_v46 = vld [vmem:[%s3153_s16 + $0x3c] sm:$0xe] }
  0xc0   : > { %2727 = vmatprep.subr.bf16.mxu0 %v3023_v1  ;;  %2749 = vmatprep.subr.bf16.mxu1 %v3023_v1  ;;  %v2432_v36 = vcombine.low %v1083_v45, %v1093_v19  ;;  %v1025_v34 = vrot.slane %v1023_v60, 4  ;;  %v1032_v43 = vshll.u32 %v3818_v0, 16  ;;  %v2538_v40 = vrot.slane %v2530_v46, 9  ;;  %v2529_v46 = vld [vmem:[%s3153_s16 + $0x30] sm:$0xe] }
  0xc1   : > { %v1351_v54 = vrot.slane %v1349_v14, 4  ;;  %v1253_v59 = vsel %vm516_vm2, %v2433_v10, 0  ;;  %v1054_v22 = vrot.slane %v1053_v24, 4  ;;  %v1350_v21 = vsel %vm3316_vm8, %v2448_v44, %v1349_v14  ;;  %v2439_v14 = vld [vmem:[%s3153_s16 + $0xc] sm:$0xe] }
  0xc2   : > { %v1987_v10 = vrot.slane %v1985_v15, 4  ;;  %v1813_v32 = vshrl.u32 %v2514_v3, 16  ;;  %v1816_v45 = vshll.u32 %v2514_v3, 16  ;;  %v3846_v4 = vsel %vm3316_vm8, %v2538_v40, %v1985_v15  ;;  %v3864_v3 = vld [vmem:[%s3153_s16 + $0x34] sm:$0xf] }
  0xc3   : > { %v1353_v25 = vsel %vm3316_vm8, %v1351_v54, %v1352_v29  ;;  %v1059_v19 = vsel %vm3183_vm5, %v1054_v22, %v3779_v6  ;;  %v3860_v44 = vrot.slane %v1032_v43, 5  ;;  %v1038_v54 = vrot.slane %v1036_v23, 4  ;;  %v2511_v6 = vld [vmem:[%s3153_s16 + $0x60] sm:$0xf] }
  0xc4   : > { %v3850_v17 = vsel %vm3316_vm8, %v1987_v10, %v1988_v30  ;;  %v2457_v24 = vcombine.low %v1350_v21, %v1353_v25  ;;  %v2447_v29 = vrot.slane %v2439_v14, 9  ;;  %v1344_v60 = vrot.slane %v1342_v63, 4  ;;  %v3870_v21 = vld [vmem:[%s3153_s16 + $0x38] sm:$0x1] }
  0xc5   : > { %v2547_v41 = vcombine.low %v3846_v4, %v3850_v17  ;;  %v1345_v0 = vrot.slane %v2407_v50, 5  ;;  %v1250_v13 = vsel %vm516_vm2, %v2432_v36, 0  ;;  %v3867_v22 = vrot.slane %v1822_v33, 5 }
  0xc6   : > { %v1978_v15 = vrot.slane %v3864_v3, 5  ;;  %v2431_v25 = vcombine.low %v1059_v19, %v1069_v49  ;;  %v1042_v43 = vshll.u32 %v2407_v50, 16  ;;  %v1039_v30 = vor.u32 %v1038_v54, %v3860_v44 }
  0xc7   : > { %2728 = vmatpush3.bf16.xpose.msra.mxu0 %v1256_v39  ;;  %2750 = vmatpush3.bf16.xpose.msra.mxu1 %v1435_v37  ;;  %v1028_v39 = vrot.slane %v1026_v2, 5  ;;  %v1432_v37 = vsel %vm516_vm2, %v2458_v7, 0  ;;  %v1815_v2 = vrot.slane %v1813_v32, 4  ;;  %v1818_v7 = vrot.slane %v1816_v45, 5 }
  0xc8   : > { %2729 = vmatprep.subr.bf16.mxu0 %v3023_v1  ;;  %2751 = vmatprep.subr.bf16.mxu1 %v3023_v1  ;;  %v1980_v23 = vrot.slane %v1978_v15, 4  ;;  %v1343_v40 = vsel %vm3316_vm8, %v2447_v29, %v1342_v63  ;;  %v1346_v10 = vsel %vm3316_vm8, %v1344_v60, %v1345_v0  ;;  %v1832_v14 = vshll.u32 %v3692_v47, 16  ;;  %v2508_v0 = vld [vmem:[%s3153_s16 + $0x54] sm:$0xf] }
  0xc9   : > { %v1029_v16 = vor.u32 %v1028_v39, %v1025_v34  ;;  %v1429_v34 = vsel %vm516_vm2, %v2457_v24, 0  ;;  %v2537_v39 = vrot.slane %v2529_v46, 9  ;;  %v1829_v32 = vor.u32 %v1828_v12, %v3867_v22  ;;  %v3906_v12 = vld [vmem:[%s3153_s16 + $0x2c] sm:$0x1]  ;;  %v2528_v46 = vld [vmem:[%s3153_s16 + $0x24] sm:$0xe] }
  0xca   : > { %v1789_v45 = vshrl.u32 %v2511_v6, 16  ;;  %v1792_v63 = vshll.u32 %v2511_v6, 16  ;;  %v1798_v19 = vshll.u32 %v3704_v11, 16  ;;  %v1802_v49 = vshrl.u32 %v3704_v11, 16 }
  0xcb   : > { %v1030_v36 = vrot.slane %v1029_v16, 4  ;;  %v3887_v33 = vsel %vm3316_vm8, %v2537_v39, %v1978_v15  ;;  %v1247_v24 = vsel %vm516_vm2, %v2431_v25, 0  ;;  %v1044_v50 = vrot.slane %v1042_v43, 5 }
  0xcc   : > { %v1040_v54 = vrot.slane %v1039_v30, 4  ;;  %v2456_v29 = vcombine.low %v1343_v40, %v1346_v10  ;;  %v1834_v60 = vrot.slane %v1832_v14, 5  ;;  %v1791_v6 = vrot.slane %v1789_v45, 4 }
  0xcd   : > { %v1035_v16 = vsel %vm3183_vm5, %v1030_v36, %v3860_v44  ;;  %v1794_v44 = vrot.slane %v1792_v63, 5  ;;  %v3911_v25 = vrot.slane %v1798_v19, 5  ;;  %v1804_v43 = vrot.slane %v1802_v49, 4 }
  0xce   : > { %v2536_v36 = vrot.slane %v2528_v46, 9  ;;  %v1045_v39 = vsel %vm3183_vm5, %v1040_v54, %v1044_v50  ;;  %v1774_v40 = vshll.u32 %v3727_v57, 16  ;;  %v1778_v10 = vshrl.u32 %v3727_v57, 16 }
  0xcf   : > { %2730 = vmatpush3.bf16.xpose.msra.mxu0 %v1253_v59  ;;  %2752 = vmatpush3.bf16.xpose.msra.mxu1 %v1432_v37  ;;  %v1981_v59 = vrot.slane %v3870_v21, 5  ;;  %v1819_v37 = vor.u32 %v1818_v7, %v1815_v2  ;;  %v3903_v2 = vld [vmem:[%s3153_s16 + $0x28] sm:$0xf]  ;;  %v1830_v7 = vrot.slane %v1829_v32, 4  ;;  %v1808_v14 = vshll.u32 %v3710_v48, 16 }
  0xd0   : > { %2731 = vmatprep.subr.bf16.mxu0 %v3023_v1  ;;  %2753 = vmatprep.subr.bf16.mxu1 %v3023_v1  ;;  %v1971_v15 = vrot.slane %v3903_v2, 5  ;;  %v1795_v19 = vor.u32 %v1794_v44, %v1791_v6  ;;  %v1805_v57 = vor.u32 %v1804_v43, %v3911_v25  ;;  %v3937_v50 = vrot.slane %v1774_v40, 5 }
  0xd1   : > { %v3891_v58 = vsel %vm3316_vm8, %v1980_v23, %v1981_v59  ;;  %v1820_v11 = vrot.slane %v1819_v37, 4  ;;  %v1974_v59 = vrot.slane %v3906_v12, 5  ;;  %v1426_v23 = vsel %vm516_vm2, %v2456_v29, 0  ;;  %v2505_v29 = vld [vmem:[%s3153_s16 + $0x48] sm:$0xf] }
  0xd2   : > { %v2546_v47 = vcombine.low %v3887_v33, %v3891_v58  ;;  %v1973_v30 = vrot.slane %v1971_v15, 4  ;;  %v3926_v32 = vsel %vm3316_vm8, %v2536_v36, %v1971_v15  ;;  %v1835_v63 = vsel %vm3183_vm5, %v1830_v7, %v1834_v60  ;;  %v3944_v7 = vld [vmem:[%s3153_s16 + $0x20] sm:$0x1] }
  0xd3   : > { %v1825_v37 = vsel %vm3183_vm5, %v1820_v11, %v3867_v22  ;;  %v1780_v54 = vrot.slane %v1778_v10, 4  ;;  %v2430_v11 = vcombine.low %v1035_v16, %v1045_v39  ;;  %v1810_v60 = vrot.slane %v1808_v14, 5  ;;  %v2455_v10 = vld [vmem:[%s4187_s1 + $0xa] sm:$0x3] }
  0xd4   : > { %v3930_v45 = vsel %vm3316_vm8, %v1973_v30, %v1974_v59  ;;  %v2525_v15 = vcombine.low %v1825_v37, %v1835_v63  ;;  %v1796_v44 = vrot.slane %v1795_v19, 4  ;;  %v1806_v43 = vrot.slane %v1805_v57, 4  ;;  %v2527_v59 = vld [vmem:[%s3153_s16 + $0x18] sm:$0xe] }
  0xd5   : > { %v2545_v22 = vcombine.low %v3926_v32, %v3930_v45  ;;  %v1784_v46 = vshll.u32 %v3735_v55, 16  ;;  %v1741_v16 = vshrl.u32 %v2505_v29, 16  ;;  %v1781_v30 = vor.u32 %v1780_v54, %v3937_v50 }
  0xd6   : > { %v1744_v39 = vshll.u32 %v2505_v29, 16  ;;  %v1754_v40 = vshrl.u32 %v3771_v35, 16  ;;  %v1244_v14 = vsel %vm516_vm2, %v2430_v11, 0  ;;  %v1887_v63 = vsel %vm516_vm2, %v2525_v15, 0 }
  0xd7   : > { %2732 = vmatpush3.bf16.xpose.msra.mxu0 %v1250_v13  ;;  %2754 = vmatpush3.bf16.xpose.msra.mxu1 %v1429_v34  ;;  %v1765_v13 = vshrl.u32 %v2508_v0, 16  ;;  %v1768_v34 = vshll.u32 %v2508_v0, 16  ;;  %v3941_v0 = vld [vmem:[%s3153_s16 + $0x1c] sm:$0xf]  ;;  %v1811_v57 = vsel %vm3183_vm5, %v1806_v43, %v1810_v60  ;;  %v1786_v52 = vrot.slane %v1784_v46, 5 }
  0xd8   : > { %2733 = vmatprep.subr.bf16.mxu0 %v3023_v1  ;;  %2755 = vmatprep.subr.bf16.mxu1 %v3023_v1  ;;  %v1964_v6 = vrot.slane %v3941_v0, 5  ;;  %v1782_v54 = vrot.slane %v1781_v30, 4  ;;  %v1746_v29 = vrot.slane %v1744_v39, 5  ;;  %v1756_v15 = vrot.slane %v1754_v40, 4  ;;  %v2917_v39 = vld [vmem:[%s3153_s16 + $0x60] sm:$0xff]  }
  0xd9   : > { %v1767_v49 = vrot.slane %v1765_v13, 4  ;;  %v1770_v48 = vrot.slane %v1768_v34, 5  ;;  %v1967_v13 = vrot.slane %v3944_v7, 5  ;;  %v2535_v34 = vrot.slane %v2527_v59, 9 }
  0xda   : > { %v1966_v36 = vrot.slane %v1964_v6, 4  ;;  %v1760_v60 = vshll.u32 %v3782_v20, 16  ;;  %v1787_v46 = vsel %vm3183_vm5, %v1782_v54, %v1786_v52  ;;  %v1726_v20 = vshll.u32 %v3823_v56, 16 }
  0xdb   : > { %v3960_v55 = vsel %vm3316_vm8, %v2535_v34, %v1964_v6  ;;  %v1574_v52 = vsel %vm516_vm2, %v2917_v39, 0  ;;  %v1736_v54 = vshll.u32 %v3828_v42, 16  ;;  %v2057_v31 = vsel %vm516_vm2, %v2547_v41, 0 }
  0xdc   : > { %v3964_v37 = vsel %vm3316_vm8, %v1966_v36, %v1967_v13  ;;  %v1730_v36 = vshrl.u32 %v3823_v56, 16  ;;  %v2499_v56 = vld [vmem:[%s3153_s16 + $0x30] sm:$0xf]  ;;  %v2054_v8 = vsel %vm516_vm2, %v2546_v47, 0  ;;  %v2051_v9 = vsel %vm516_vm2, %v2545_v22, 0 }
  0xdd   : > { %v2544_v19 = vcombine.low %v3960_v55, %v3964_v37 }
  0xdf   : > { %2734 = vmatpush3.bf16.xpose.msra.mxu0 %v1247_v24  ;;  %2756 = vmatpush3.bf16.xpose.msra.mxu1 %v1426_v23  ;;  %v1771_v24 = vor.u32 %v1770_v48, %v1767_v49  ;;  %v1750_v23 = vshll.u32 %v3771_v35, 16  ;;  %v1801_v35 = vsel %vm3183_vm5, %v1796_v44, %v3911_v25  ;;  %v1743_v48 = vrot.slane %v1741_v16, 4  ;;  %v2916_v25 = vld [vmem:[%s3153_s16 + $0x6c] sm:$0xff]   ;;  %v2502_v44 = vld [vmem:[%s3153_s16 + $0x3c] sm:$0xf] }
  0xe0   : > { %2735 = vmatprep.subr.bf16.mxu0 %v3023_v1  ;;  %2781 = vmatprep.subr.bf16.mxu1 %v3023_v1  ;;  %v2524_v6 = vcombine.low %v1801_v35, %v1811_v57  ;;  %v1717_v16 = vshrl.u32 %v2502_v44, 16  ;;  %v1720_v34 = vshll.u32 %v2502_v44, 16  ;;  %v1577_v30 = vsel %vm516_vm2, %v2916_v25, 0 }
  0xe1   : > { %v1772_v49 = vrot.slane %v1771_v24, 4  ;;  %v1752_v11 = vrot.slane %v1750_v23, 5  ;;  %v1747_v59 = vor.u32 %v1746_v29, %v1743_v48  ;;  %v2429_v24 = vld [vmem:[%s4187_s1 + $0x8] sm:$0x3]  ;;  %v1728_v57 = vrot.slane %v1726_v20, 5 }
  0xe2   : > { %v1722_v35 = vrot.slane %v1720_v34, 5  ;;  %v1693_v44 = vshrl.u32 %v2499_v56, 16  ;;  %v2048_v5 = vsel %vm516_vm2, %v2544_v19, 0 }
  0xe3   : > { %v1777_v43 = vsel %vm3183_vm5, %v1772_v49, %v3937_v50  ;;  %v1757_v13 = vor.u32 %v1756_v15, %v1752_v11  ;;  %v1884_v50 = vsel %vm516_vm2, %v2524_v6, 0  ;;  %v1748_v40 = vrot.slane %v1747_v59, 4  ;;  %v2918_v59 = vld [vmem:[%s3153_s16 + $0x54] sm:$0xff]  }
  0xe4   : > { %v2523_v23 = vcombine.low %v1777_v43, %v1787_v46  ;;  %v1732_v49 = vrot.slane %v1730_v36, 4  ;;  %v1702_v43 = vshll.u32 %v3864_v3, 16  ;;  %v1706_v46 = vshrl.u32 %v3864_v3, 16 }
  0xe5   : > { %v1753_v29 = vsel %vm3183_vm5, %v1748_v40, %v1752_v11  ;;  %v1695_v11 = vrot.slane %v1693_v44, 4  ;;  %v1712_v40 = vshll.u32 %v3870_v21, 16  ;;  %v2493_v44 = vld [vmem:[%s3153_s16 + $0x18] sm:$0xf] }
  0xe6   : > { %2758 = vmatmul.mubr.msk.bf16.vlgmr.msra.gmra.mxu1 %vm516_vm2, %v2455_v10  ;;  %v1758_v10 = vrot.slane %v1757_v13, 4  ;;  %v1881_v48 = vsel %vm516_vm2, %v2523_v23, 0  ;;  %v1733_v6 = vor.u32 %v1732_v49, %v1728_v57  ;;  %v1704_v20 = vrot.slane %v1702_v43, 5 }
  0xe7   : > { %2736 = vmatpush3.bf16.xpose.msra.mxu0 %v1244_v14  ;;  %2782 = vmatpush3.bf16.xpose.msra.mxu1 %v1887_v63  ;;  %v1762_v14 = vrot.slane %v1760_v60, 5  ;;  %v1719_v63 = vrot.slane %v1717_v16, 4  ;;  %v1696_v60 = vshll.u32 %v2499_v56, 16  ;;  %v1738_v16 = vrot.slane %v1736_v54, 5 }
  0xe8   : > { %2761 = vmatprep.subr.bf16.mxu0 %v3023_v1  ;;  %2783 = vmatprep.subr.bf16.mxu1 %v3023_v1  ;;  %v1708_v36 = vrot.slane %v1706_v46, 4  ;;  %v1678_v49 = vshll.u32 %v3903_v2, 16  ;;  %v1682_v56 = vshrl.u32 %v3903_v2, 16  ;;  %v1714_v54 = vrot.slane %v1712_v40, 5 }
  0xe9   : > { %2797 = vmatprep.mubr.msk.bf16.mxu1 %vm3024_vm3, %v3023_v1  ;;  %v1763_v15 = vsel %vm3183_vm5, %v1758_v10, %v1762_v14  ;;  %v1723_v25 = vor.u32 %v1722_v35, %v1719_v63  ;;  %v1698_v34 = vrot.slane %v1696_v60, 5  ;;  %v1688_v43 = vshll.u32 %v3906_v12, 16 }
  0xea   : > { %v2522_v13 = vcombine.low %v1753_v29, %v1763_v15  ;;  %v1709_v14 = vor.u32 %v1708_v36, %v1704_v20  ;;  %v2920_v36 = vld [vmem:[%s3153_s16 + $0x3c] sm:$0xff]  }
  0xeb   : > { %v1724_v42 = vrot.slane %v1723_v25, 4  ;;  %v1699_v10 = vor.u32 %v1698_v34, %v1695_v11  ;;  %v1680_v25 = vrot.slane %v1678_v49, 5  ;;  %v1654_v11 = vshll.u32 %v3941_v0, 16 }
  0xec   : > { %v1878_v3 = vsel %vm516_vm2, %v2522_v13, 0  ;;  %v1710_v21 = vrot.slane %v1709_v14, 4  ;;  %v1658_v34 = vshrl.u32 %v3941_v0, 16  ;;  %v1664_v14 = vshll.u32 %v3944_v7, 16 }
  0xed   : > { %v1729_v39 = vsel %vm3183_vm5, %v1724_v42, %v1728_v57  ;;  %v1700_v57 = vrot.slane %v1699_v10, 4  ;;  %v1645_v42 = vshrl.u32 %v2493_v44, 16  ;;  %v1565_v10 = vsel %vm516_vm2, %v2920_v36, 0 }
  0xee   : > { %2738 = vmatmul.mubr.msk.bf16.vlgmr.msra.gmra.mxu0 %vm516_vm2, %v2429_v24  ;;  %v1734_v24 = vrot.slane %v1733_v6, 4  ;;  %v1684_v6 = vrot.slane %v1682_v56, 4  ;;  %v1660_v40 = vrot.slane %v1658_v34, 4  ;;  %v1666_v7 = vrot.slane %v1664_v14, 5 }
  0xef   : > { %2762 = vmatpush3.bf16.xpose.msra.mxu0 %v1577_v30  ;;  %2784 = vmatpush3.bf16.xpose.msra.mxu1 %v1884_v50  ;;  %v2496_v30 = vld [vmem:[%s3153_s16 + $0x24] sm:$0xf]  ;;  %v1571_v50 = vsel %vm516_vm2, %v2918_v59, 0  ;;  %v1705_v46 = vsel %vm3183_vm5, %v1700_v57, %v1704_v20  ;;  %v1715_v59 = vsel %vm3183_vm5, %v1710_v21, %v1714_v54 }
  0xf0   : > { %2763 = vmatprep.subr.bf16.mxu0 %v3023_v1  ;;  %2785 = vmatprep.subr.bf16.mxu1 %v3023_v1  ;;  %v1739_v23 = vsel %vm3183_vm5, %v1734_v24, %v1738_v16  ;;  %v1669_v63 = vshrl.u32 %v2496_v30, 16  ;;  %v1672_v35 = vshll.u32 %v2496_v30, 16  ;;  %v1685_v24 = vor.u32 %v1684_v6, %v1680_v25  ;;  %v2922_v6 = vld [vmem:[%s3153_s16 + $0x24] sm:$0xff]  }
  0xf1   : > { %2777 = vmatprep.mubr.msk.bf16.mxu0 %vm3024_vm3, %v3023_v1  ;;  %v1648_v16 = vshll.u32 %v2493_v44, 16  ;;  %v2520_v12 = vcombine.low %v1705_v46, %v1715_v59  ;;  %v1690_v30 = vrot.slane %v1688_v43, 5  ;;  %v2923_v43 = vld [vmem:[%s3153_s16 + $0x18] sm:$0xff]  }
  0xf2   : > { %v1671_v29 = vrot.slane %v1669_v63, 4  ;;  %v1674_v15 = vrot.slane %v1672_v35, 5  ;;  %v1556_v46 = vsel %vm516_vm2, %v2923_v43, 0  ;;  %v2133_v43 = vld [vmem:[#allocation2] sm:$0xf] }
  0xf3   : > { %v1872_v0 = vsel %vm516_vm2, %v2520_v12, 0 }
  0xf4   : > { %v1675_v13 = vor.u32 %v1674_v15, %v1671_v29 }
  0xf6   : > { %v1676_v20 = vrot.slane %v1675_v13, 4 }
  0xf7   : > { %2764 = vmatpush3.bf16.xpose.msra.mxu0 %v1574_v52  ;;  %2786 = vmatpush3.bf16.xpose.msra.mxu1 %v1881_v48  ;;  %v2919_v52 = vld [vmem:[%s3153_s16 + $0x48] sm:$0xff]   ;;  %v2521_v48 = vcombine.low %v1729_v39, %v1739_v23  ;;  %v1650_v39 = vrot.slane %v1648_v16, 5  ;;  %v1656_v23 = vrot.slane %v1654_v11, 5  ;;  %v2069_v16 = vsel %vm516_vm2, %v2551_v28, 0 }
  0xf8   : > { %2765 = vmatprep.subr.bf16.mxu0 %v3023_v1  ;;  %2787 = vmatprep.subr.bf16.mxu1 %v3023_v1  ;;  %v1568_v60 = vsel %vm516_vm2, %v2919_v52, 0  ;;  %v1681_v63 = vsel %vm3183_vm5, %v1676_v20, %v1680_v25  ;;  %v2921_v52 = vld [vmem:[%s3153_s16 + $0x30] sm:$0xff]   ;;  %v2063_v28 = vsel %vm516_vm2, %v2549_v38, 0 }
  0xf9   : > { %v1875_v2 = vsel %vm516_vm2, %v2521_v48, 0  ;;  %v1661_v56 = vor.u32 %v1660_v40, %v1656_v23  ;;  %v1562_v21 = vsel %vm516_vm2, %v2921_v52, 0 }
  0xfb   : > { %v1662_v57 = vrot.slane %v1661_v56, 4 }
  0xfd   : > { %v1667_v25 = vsel %vm3183_vm5, %v1662_v57, %v1666_v7 }
  0xff   : > { %2766 = vmatpush3.bf16.xpose.msra.mxu0 %v1571_v50  ;;  %2788 = vmatpush3.bf16.xpose.msra.mxu1 %v1878_v3  ;;  %v1647_v50 = vrot.slane %v1645_v42, 4  ;;  %v1686_v3 = vrot.slane %v1685_v24, 4  ;;  %v2483_v24 = vld [vmem:[%s4187_s1 + $0xc] sm:$0x3] }
 0x100   : > { %2767 = vmatprep.subr.bf16.mxu0 %v3023_v1  ;;  %2789 = vmatprep.subr.bf16.mxu1 %v3023_v1 }
 0x101   : > { %v1691_v35 = vsel %vm3183_vm5, %v1686_v3, %v1690_v30  ;;  %v1651_v49 = vor.u32 %v1650_v39, %v1647_v50  ;;  %v3025_v30 = vmov 0  }
 0x102   : > { %v2519_v48 = vcombine.low %v1681_v63, %v1691_v35  ;;  %2899 = vset.pattern.permute.xlu0 %v3025_v30  ;;  %v2144_v30 = vld [vmem:[#allocation3] sm:$0xf] }
 0x103   : > { %v1652_v54 = vrot.slane %v1651_v49, 4  ;;  %2115 = vperm.xlu0 %2899, %v2112_v62  }
 0x104   : > { %v1869_v29 = vsel %vm516_vm2, %v2519_v48, 0 }
 0x105   : > { %v1657_v15 = vsel %vm3183_vm5, %v1652_v54, %v1656_v23 }
 0x106   : > { %v2518_v44 = vcombine.low %v1657_v15, %v1667_v25 }
 0x107   : > { %2768 = vmatpush3.bf16.xpose.msra.mxu0 %v1568_v60  ;;  %2790 = vmatpush3.bf16.xpose.msra.mxu1 %v1875_v2  ;;  %v1559_v60 = vsel %vm516_vm2, %v2922_v6, 0 }
 0x108   : > { %2769 = vmatprep.subr.bf16.mxu0 %v3023_v1  ;;  %2791 = vmatprep.subr.bf16.mxu1 %v3023_v1  ;;  %v1866_v2 = vsel %vm516_vm2, %v2518_v44, 0 }
 0x10f   : > { %2770 = vmatpush3.bf16.xpose.msra.mxu0 %v1565_v10  ;;  %2792 = vmatpush3.bf16.xpose.msra.mxu1 %v1872_v0  ;;  %v2135_v10 = vstv %s2132_s17 }
 0x110   : > { %2771 = vmatprep.subr.bf16.mxu0 %v3023_v1  ;;  %2793 = vmatprep.subr.bf16.mxu1 %v3023_v1  ;;  %2924 = vrcp.f32 %v2135_v10 }
 0x117   : > { %2772 = vmatpush3.bf16.xpose.msra.mxu0 %v1562_v21  ;;  %2794 = vmatpush3.bf16.xpose.msra.mxu1 %v1869_v29 }
 0x118   : > { %2773 = vmatprep.subr.bf16.mxu0 %v3023_v1  ;;  %2795 = vmatprep.subr.bf16.mxu1 %v3023_v1 }
 0x11d   : > { %v2925_v0 = vpop.eup %2924 }
 0x11e   : > { %2822 = vpush %v2925_v0 }
 0x11f   : > { %2774 = vmatpush3.bf16.xpose.msra.mxu0 %v1559_v60  ;;  %2796 = vmatpush3.bf16.xpose.msra.mxu1 %v1866_v2 }
 0x120   : > { %2775 = vmatprep.subr.bf16.mxu0 %v3023_v1 }
 0x126   : > { %v685_v59 = vpop.f32.mrf.mxu1  ;;  %2798 = vmatmul.mubr.msk.bf16.vlgmr.msra.gmra.mxu1 %vm516_vm2, %v2517_v27 }
 0x127   : > { %2776 = vmatpush3.bf16.xpose.msra.mxu0 %v1556_v46 }
 0x128   : > { %2801 = vmatprep.subr.bf16.mxu0 %v3023_v1  ;;  %v2679_v13 = vpop.f32.mrf.mxu1 }
 0x12a   : > { %v688_v42 = vpop.f32.mrf.mxu1 }
 0x12c   : > { %v2680_v11 = vpop.f32.mrf.mxu1 }
 0x12e   : > { %v578_v34 = vpop.f32.mrf.mxu0  ;;  %2778 = vmatmul.mubr.msk.bf16.vlgmr.msra.gmra.mxu0 %vm516_vm2, %v2483_v24 }
 0x12f   : > { %v686_v36 = vadd.f32 %v685_v59, %v578_v34  ;;  %2802 = vmatpush3.bf16.xpose.msra.mxu0 %v2069_v16  ;;  %2817 = vmatprep.mubr.msk.bf16.mxu0 %vm3024_vm3, %v3023_v1 }
 0x130   : > { %v2659_v12 = vpop.f32.mrf.mxu0  ;;  %2803 = vmatprep.subr.bf16.mxu0 %v3023_v1 }
 0x132   : > { %v581_v20 = vpop.f32.mrf.mxu0 }
 0x134   : > { %v2660_v50 = vpop.f32.mrf.mxu0 }
 0x137   : > { %2804 = vmatpush3.bf16.xpose.msra.mxu0 %v2066_v26 }
 0x138   : > { %2805 = vmatprep.subr.bf16.mxu0 %v3023_v1 }
 0x13f   : > { %2806 = vmatpush3.bf16.xpose.msra.mxu0 %v2063_v28 }
 0x140   : > { %2807 = vmatprep.subr.bf16.mxu0 %v3023_v1 }
 0x147   : > { %2808 = vmatpush3.bf16.xpose.msra.mxu0 %v2060_v51 }
 0x148   : > { %2809 = vmatprep.subr.bf16.mxu0 %v3023_v1 }
 0x14f   : > { %2810 = vmatpush3.bf16.xpose.msra.mxu0 %v2057_v31  ;;  %s2823_s26 = spop %2822 }
 0x150   : > { %2811 = vmatprep.subr.bf16.mxu0 %v3023_v1  ;;  %s2138_s8 = smul.f32 128.0, %s2823_s26 }
 0x151   : > { %s2151_s16 = smul.f32 %s2823_s26, %s2147_s30 }
 0x152   : > { %v2139_v59 = vstv %s2138_s8 }
 0x153   : > { %v2152_v24 = vstv %s2151_s16 }
 0x157   : > { %2812 = vmatpush3.bf16.xpose.msra.mxu0 %v2054_v8 }
 0x158   : > { %2813 = vmatprep.subr.bf16.mxu0 %v3023_v1 }
 0x15f   : > { %2814 = vmatpush3.bf16.xpose.msra.mxu0 %v2051_v9 }
 0x160   : > { %2815 = vmatprep.subr.bf16.mxu0 %v3023_v1 }
 0x166   : > { %v991_v38 = vpop.f32.mrf.mxu1 }
 0x167   : > { %2816 = vmatpush3.bf16.xpose.msra.mxu0 %v2048_v5 }
 0x168   : > { %v2719_v18 = vpop.f32.mrf.mxu1 }
 0x16a   : > { %v994_v53 = vpop.f32.mrf.mxu1 }
 0x16c   : > { %v2720_v4 = vpop.f32.mrf.mxu1 }
 0x16e   : > { %v861_v17 = vpop.f32.mrf.mxu0  ;;  %2818 = vmatmul.mubr.msk.bf16.vlgmr.msra.gmra.mxu0 %vm516_vm2, %v2543_v61 }
 0x16f   : > { %v867_v41 = vadd.f32 %v861_v17, %v686_v36 }
 0x170   : > { %v2699_v1 = vpop.f32.mrf.mxu0 }
 0x171   : > { %v997_v33 = vadd.f32 %v991_v38, %v867_v41 }
 0x172   : > { %v864_v58 = vpop.f32.mrf.mxu0 }
 0x174   : > { %v2700_v47 = vpop.f32.mrf.mxu0 }
 0x17e   : > { %v2116_v29 = vpop.permute.xlu0 %2115 }
 0x1a6   : > { %v1483_v32 = vpop.f32.mrf.mxu1 }
 0x1a8   : > { %v2759_v45 = vpop.f32.mrf.mxu1 }
 0x1aa   : > { %v1486_v22 = vpop.f32.mrf.mxu1 }
 0x1ac   : > { %v2760_v55 = vpop.f32.mrf.mxu1 }
 0x1ae   : > { %v1301_v37 = vpop.f32.mrf.mxu0 }
 0x1af   : > { %v1307_v19 = vadd.f32 %v1301_v37, %v997_v33 }
 0x1b0   : > { %v2739_v3 = vpop.f32.mrf.mxu0 }
 0x1b1   : > { %v1489_v39 = vadd.f32 %v1483_v32, %v1307_v19 }
 0x1b2   : > { %v1304_v23 = vpop.f32.mrf.mxu0 }
 0x1b4   : > { %v2740_v40 = vpop.f32.mrf.mxu0 }
 0x1e6   : > { %v1923_v14 = vpop.f32.mrf.mxu1 }
 0x1e8   : > { %v2799_v63 = vpop.f32.mrf.mxu1 }
 0x1ea   : > { %v1926_v35 = vpop.f32.mrf.mxu1 }
 0x1ec   : > { %v2800_v49 = vpop.f32.mrf.mxu1 }
 0x1ee   : > { %v1613_v56 = vpop.f32.mrf.mxu0 }
 0x1ef   : > { %v1619_v52 = vadd.f32 %v1613_v56, %v1489_v39 }
 0x1f0   : > { %v2779_v48 = vpop.f32.mrf.mxu0 }
 0x1f1   : > { %v1929_v54 = vadd.f32 %v1923_v14, %v1619_v52 }
 0x1f2   : > { %v1616_v57 = vpop.f32.mrf.mxu0 }
 0x1f4   : > { %v2780_v7 = vpop.f32.mrf.mxu0 }
 0x22e   : > { %v2105_v21 = vpop.f32.mrf.mxu0 }
 0x22f   : > { %v2111_v15 = vadd.f32 %v2105_v21, %v1929_v54 }
 0x230   : > { %v2819_v25 = vpop.f32.mrf.mxu0 }
 0x231   : > { %v2118_v6 = vadd.f32 %v2116_v29, %v2111_v15 }
 0x232   : > { %v2108_v44 = vpop.f32.mrf.mxu0 }
 0x233   : > { %2119 = vst [vmem:[%s232_s12] sm:$0xf] %v2118_v6  ;;  %v2121_v60 = vsel %vm2120_vm9, %v2118_v6, 0.0 }
 0x234   : > { %2122 = vadd.xlane.f32.xlu0 %v2121_v60  ;;  %v2820_v2 = vpop.f32.mrf.mxu0 }
 0x2bd   : > { %v2123_v27 = vpop.xlane.xlu0 %2122 }
 0x2be   : > { %v2124_v46 = vmul.f32 0.0078125, %v2123_v27 }
 0x2c0   : > { %v2125_v13 = vsub.f32 %v2118_v6, %v2124_v46  ;;  %v2134_v42 = vsub.f32 %v2124_v46, %v2133_v43 }
 0x2c2   : > { %v2146_v16 = vmul.f32 %v2134_v42, %v2134_v42  ;;  %v2140_v11 = vmul.f32 %v2139_v59, %v2134_v42  ;;  %v2126_v34 = vmul.f32 %v2125_v13, %v2125_v13 }
 0x2c4   : > { %v2141_v36 = vadd.f32 %v2140_v11, %v2133_v43  ;;  %v2153_v12 = vmul.f32 %v2152_v24, %v2146_v16  ;;  %v2127_v20 = vsel %vm2120_vm9, %v2126_v34, 0.0 }
 0x2c5   : > { %2128 = vadd.xlane.f32.xlu1 %v2127_v20 }
 0x2c6   : > { %2143 = vst.msk [vmem:[#allocation2] sm:$0xf] %vm2142_vm10, %v2141_v36 }
 0x34e   : > { %v2129_v50 = vpop.xlane.xlu1 %2128 }
 0x34f   : > { %v2145_v26 = vadd.f32 %v2144_v30, %v2129_v50  ;;  %2159 = sbr.rel (%p2553_p0) target bundleno = 878 (0x36e), region = 40 }
 0x351   : > { %v2154_v62 = vadd.f32 %v2153_v12, %v2145_v26 }
 0x353   : > { %2155 = vst.msk [vmem:[#allocation3] sm:$0xf] %vm2142_vm10, %v2154_v62 }
 0x354   : > { %v2160_v28 = vld [vmem:[#allocation2] sm:$0xf] }
 0x355   : > { %2161 = vst.msk [vmem:[%s3138_s27] sm:$0xf] %vm2142_vm10, %v2160_v28 }
 0x35a   : > { %v2162_v51 = vld [vmem:[#allocation3] sm:$0xf] }
 0x35b   : > { %v2163_v31 = vmul.f32 0.00390625, %v2162_v51 }
 0x35d   : > { %v2164_v8 = vadd.f32 1e-05, %v2163_v31 }
 0x35f   : > { %2926 = vrsqrt.f32 %v2164_v8 }
 0x36c   : > { %v2927_v9 = vpop.eup %2926 }
 0x36d   : > { %2166 = vst.msk [vmem:[%s3143_s9] sm:$0xf] %vm2142_vm10, %v2927_v9 }
 0x36e PF: > { %s2555_s10 = sshll.u32 %s3008_s22, 1  ;;  %s2191_s28 = sshll.u32 %s232_s12, 4  ;;  %s2192_s28 = int_to_ptr.vmem [resolvable:$true] %s2191_s28 }
 0x36f   : > { %s2187_s14 = sadd.s32 %s3004_s21, %s2555_s10  ;;  %s4203_s26 = sand.u32 1, %s2996_s19  }
 0x370   : > { %s2556_s29 = sshll.u32 %s2187_s14, 6  ;;  %s2168_s30 = scalar_lea.sflag [#allocation5], %s4203_s26 }
 0x371   : > { %s2189_s17 = scalar_lea.hbm %s4189_s3, %s2556_s29  ;;  %s2928_s8 = scalar_lea.vmem %s2192_s28, 64 }
 0x372   : > { %p2929_p1 = scmp.ne.s32.totalorder %s2192_s28, %s2928_s8  ;;  %s3026_s9 = smov [#allocation4]  }
 0x373   : > { %s2932_s16 = sshll.u32 %s3026_s9, 4  ;;  %s2933_s16 = int_to_ptr.vmem [resolvable:$false] %s2932_s16 }
 0x374   : > { %p2930_p2 = pnand %p2929_p1, %p3108_p3  ;;  %s2934_s22 = scalar_lea.vmem %s2933_s16, 128 }
 0x375   : > { %p2935_p5 = scmp.lt.s32.totalorder %s2192_s28, %s2933_s16  ;;  %p2936_p6 = scmp.lt.s32.totalorder %s2934_s22, %s2928_s8 }
 0x376   : > { %p2931_p4 = pneg %p2930_p2 }
 0x377   : > { %p2937_p7 = por %p2936_p6, %p2935_p5 }
 0x379   : > { %p2938_p9 = pnand %p2937_p7, %p2931_p4 }
 0x37b   : > { %2941 = shalt.err (!%p2938_p9)
}
 0x37c   : > { %s2942_s21 = scalar_lea.hbm %s2189_s17, 64  ;;  %s2946_s10 = scalar_lea.hbm %s4189_s3, 256 }
 0x37d   : > { %p2943_p10 = scmp.ne.s32.totalorder %s2189_s17, %s2942_s21  ;;  %p2947_p13 = scmp.lt.s32.totalorder %s2189_s17, %s4189_s3 }
 0x37e   : > { %p2948_p0 = scmp.lt.s32.totalorder %s2946_s10, %s2942_s21 }
 0x37f   : > { %p2944_p11 = pnand %p2943_p10, %p3108_p3 }
 0x380   : > { %p2949_p1 = por %p2948_p0, %p2947_p13 }
 0x381   : > { %p2945_p12 = pneg %p2944_p11 }
 0x383   : > { %p2950_p2 = pnand %p2949_p1, %p2945_p12 }
 0x385   : > { %2953 = shalt.err (!%p2950_p2)
}
 0x386   : > { %2824 = dma.vmem_to_hbm [thread:$0]  (%p3108_p3), %s2192_s28, 64, %s2189_s17, %s2168_s30  }
 0x387 PF: > { %p2830_p4 = scmp.ge.s32.totalorder %s3020_s25, 2  ;;  %s2209_s15 = sand.u32 1, %s2992_s18  }
 0x388   : > { %s2210_s27 = scalar_lea.sflag [#allocation5], %s2209_s15 }
 0x389   : > { %p2827_p5 = pnand %p2830_p4, %p3117_p8 }
 0x38b   : > { %p2828_p6 = pneg %p2827_p5 }
 0x38d   : > { %2987 = dma.done.wait (%p2828_p6), %s2210_s27, 64  }
 0x38e   : > { %2989 = vsyncadd (%p2828_p6), %s2210_s27, 4294967232  ;;  %s19_s25 = sadd.s32 1, %s3020_s25   ;;  %s4204_s6 = sld [smem:[#allocation7_spill]] }
 0x38f   : > { %p16_p7 = scmp.ge.s32.totalorder %s19_s25, 6   ;;  %s4205_s28 = sld [smem:[#allocation8_spill]] }
 0x390   : > { %s4206_s18 = smov %s2996_s19  ;;  %s4207_s19 = smov %s3000_s20 }
 0x391   : > { %s4208_s20 = smov %s3126_s11  ;;  %s4209_s21 = smov %s3012_s23 }
 0x392   : > { %s4210_s22 = smov %s3016_s24  ;;  %18 = sbr.rel (!%p16_p7) target bundleno = 5 (0x5), region = 110 }
 0x394   : > { %s4211_s23 = smov %s4204_s6 }
 0x395   : > { %s4212_s24 = smov %s4205_s28 }
 0x397   :  { %2229 = vsyncpa [#allocation5], 1 }
 0x398   :  { %2231 = vsyncpa [#allocation5 + $0x1], 1 }

</bundles_post_ra>
